<compile_context>
chip_gen: v6e
topology: v6e:2x2x1
jax: 0.10.0
libtpu: 0.0.40
codegen_flags: <defaults>
</compile_context>

<pallas_src>
import jax
import jax.numpy as jnp
import numpy as np
from jax.experimental import pallas as pl
from jax.experimental.pallas import tpu as pltpu


def rnn_attn_kernel(x_ref,       # (S, I_pad, TB)  batch-in-lanes input tile
                    w_ih_ref,    # (H, I_pad)
                    w_hh_ref,    # (H, H)
                    b_rnn_ref,   # (H, 1)   b_ih + b_hh
                    w_att_ref,   # (H, 1)   attention weight column
                    w1_ref,      # (F, H)
                    b1_ref,      # (F, 1)
                    w2_ref,      # (O, F)
                    b2_ref,      # (O, 1)
                    out_ref,     # (O, TB)
                    hs_ref,      # VMEM scratch (S, H, TB) f32: per-step hidden states
                    sc_ref):     # VMEM scratch (S, TB)    f32: per-step attn scores
    S, _, TB = x_ref.shape
    H = w_hh_ref.shape[0]
    mm = w_hh_ref.dtype          # matmul operand dtype (f32 or bf16), set by wrapper

    w_ih = w_ih_ref[...]
    w_hh = w_hh_ref[...]
    # Hoisted broadcasts (JAX does not CSE broadcast_in_dim inside the unroll).
    b_rnn = jnp.broadcast_to(b_rnn_ref[...], (H, TB))      # (H, TB) f32
    w_att = jnp.broadcast_to(w_att_ref[...], (H, TB))      # (H, TB) f32

    # ---- Elman recurrence h_t = tanh(W_ih x_t + b + W_hh h_{t-1}), unrolled ----
    # The W_ih @ x_t projection is independent of h, so the LLO scheduler can hide
    # it under the previous step's W_hh matmul + tanh.  Each h_t / score_t goes to
    # VMEM scratch immediately so vreg pressure stays bounded.
    h = jnp.zeros((H, TB), jnp.float32)
    for t in range(S):                                      # S is small & static
        xw_t = jnp.dot(w_ih, x_ref[t],
                       preferred_element_type=jnp.float32) + b_rnn
        h = jnp.tanh(xw_t + jnp.dot(w_hh, h.astype(mm),
                                    preferred_element_type=jnp.float32))
        hs_ref[t] = h
        # Fused attention score: VPU multiply + sublane reduce (off the MXU path).
        sc_ref[pl.ds(t, 1), :] = jnp.sum(w_att * h, axis=0, keepdims=True)

    # ---- Softmax over the sequence axis on lane-dense (S, TB) scores ----
    scores = sc_ref[...]                                    # (S, TB) f32
    m = jnp.max(scores, axis=0, keepdims=True)
    e = jnp.exp(scores - m)
    attn = e / jnp.sum(e, axis=0, keepdims=True)            # softmax over seq

    # ---- Context vector: ctx = sum_t attn_t * h_t, accumulated step-by-step ----
    ctx = jnp.zeros((H, TB), jnp.float32)
    for t in range(S):
        ctx = ctx + attn[t:t + 1, :] * hs_ref[t]            # (H, TB)

    # ---- MLP head: fc1 -> ReLU -> fc2 (batch stays in lanes) ----
    h1 = jnp.maximum(
        jnp.dot(w1_ref[...], ctx.astype(mm),
                preferred_element_type=jnp.float32) + b1_ref[...],
        0.0)
    out_ref[...] = (jnp.dot(w2_ref[...], h1.astype(mm),
                            preferred_element_type=jnp.float32) + b2_ref[...])


def _round_up(x, m):
    return ((x + m - 1) // m) * m


def _choose_tile_b(B):
    # Batch lives in lanes, so tiles are multiples of 128.  Larger tiles amortize
    # the serial recurrence and per-grid-step overhead; keep >= 2 grid steps (and
    # no extra padding vs the 128 baseline) so the "parallel" batch axis can still
    # shard across v7x's 2 TensorCores.
    base = _round_up(max(B, 1), 128)
    if base <= 128:
        return 128
    for tb in (512, 256, 128):
        bp = _round_up(B, tb)
        if bp == base and bp // tb >= 2:
            return tb
    return 128


def rnn_classifier_with_attention(x, params, *, mm_dtype=jnp.float32):
    """x: (B, S, I) float32, as in PyTorch batch_first RNN input. Returns (B, O)."""
    B, S, I = x.shape
    H = params["w_hh"].shape[0]
    F = params["w1"].shape[0]
    O = params["w2"].shape[0]

    I_pad = _round_up(I, 8)                 # 25 -> 32: aligned sublanes / MXU K dim
    TB = _choose_tile_b(B)
    Bp = _round_up(B, TB)

    # Batch-in-lanes layout: x -> (S, I_pad, Bp).  Zero padding of I / batch rows
    # does not change the result (padded batch columns are sliced off at the end).
    x_sib = jnp.transpose(x.astype(jnp.float32), (1, 2, 0))          # (S, I, B)
    x_sib = jnp.pad(x_sib, ((0, 0), (0, I_pad - I), (0, Bp - B)))
    x_sib = x_sib.astype(mm_dtype)

    # Weights stay in PyTorch (out, in) orientation; matmul operands are cast to
    # mm_dtype host-side (halves HBM->VMEM bytes when bf16); biases stay f32 and
    # are added after f32 accumulation.
    w_ih = jnp.pad(params["w_ih"].astype(jnp.float32),
                   ((0, 0), (0, I_pad - I))).astype(mm_dtype)        # (H, I_pad)
    w_hh = params["w_hh"].astype(mm_dtype)                           # (H, H)
    b_rnn = (params["b_ih"] + params["b_hh"]).reshape(H, 1).astype(jnp.float32)
    w_att = jnp.transpose(params["w_att"]).astype(jnp.float32)       # (H, 1)
    # NOTE: b_att is dropped — softmax is shift-invariant, so it is a no-op.
    w1 = params["w1"].astype(mm_dtype)                               # (F, H)
    b1 = params["b1"].reshape(F, 1).astype(jnp.float32)
    w2 = params["w2"].astype(mm_dtype)                               # (O, F)
    b2 = params["b2"].reshape(O, 1).astype(jnp.float32)

    grid = (Bp // TB,)
    out = pl.pallas_call(
        rnn_attn_kernel,
        out_shape=jax.ShapeDtypeStruct((O, Bp), jnp.float32),
        grid_spec=pltpu.PrefetchScalarGridSpec(
            num_scalar_prefetch=0,
            grid=grid,
            in_specs=[
                pl.BlockSpec((S, I_pad, TB), lambda b: (0, 0, b)),   # x: batch-tiled
                pl.BlockSpec((H, I_pad), lambda b: (0, 0)),          # weights resident
                pl.BlockSpec((H, H), lambda b: (0, 0)),
                pl.BlockSpec((H, 1), lambda b: (0, 0)),
                pl.BlockSpec((H, 1), lambda b: (0, 0)),
                pl.BlockSpec((F, H), lambda b: (0, 0)),
                pl.BlockSpec((F, 1), lambda b: (0, 0)),
                pl.BlockSpec((O, F), lambda b: (0, 0)),
                pl.BlockSpec((O, 1), lambda b: (0, 0)),
            ],
            out_specs=pl.BlockSpec((O, TB), lambda b: (0, b)),       # lane-dense store
            scratch_shapes=[
                pltpu.VMEM((S, H, TB), jnp.float32),   # per-step hidden states
                pltpu.VMEM((S, TB), jnp.float32),      # per-step attention scores
            ]),
        compiler_params=pltpu.CompilerParams(
            dimension_semantics=("parallel",)),         # batch tiles -> both TCs (v7x)
    )(x_sib, w_ih, w_hh, b_rnn, w_att, w1, b1, w2, b2)

    return jnp.transpose(out[:, :B])                    # (B, O)


def reference_forward(x, params):
    """Pure-JAX reference mirroring the PyTorch module."""
    B, S, I = x.shape
    H = params["w_hh"].shape[0]
    h = jnp.zeros((B, H), jnp.float32)
    outs = []
    for t in range(S):
        h = jnp.tanh(x[:, t, :] @ params["w_ih"].T + params["b_ih"]
                     + h @ params["w_hh"].T + params["b_hh"])
        outs.append(h)
    rnn_out = jnp.stack(outs, axis=1)                          # (B, S, H)
    scores = rnn_out @ params["w_att"].T + params["b_att"]     # (B, S, 1)
    attn = jax.nn.softmax(scores, axis=1)
    ctx = jnp.sum(attn * rnn_out, axis=1)                      # (B, H)
    h1 = jnp.maximum(ctx @ params["w1"].T + params["b1"], 0.0)
    return h1 @ params["w2"].T + params["b2"]


def init_params(key, input_dim=25, hidden_dim=64, fc_dim=32, output_dim=4):
    ks = jax.random.split(key, 10)

    def u(k, shape, fan_in):
        bound = 1.0 / np.sqrt(fan_in)
        return jax.random.uniform(k, shape, jnp.float32, -bound, bound)

    return {
        "w_ih": u(ks[0], (hidden_dim, input_dim), hidden_dim),
        "w_hh": u(ks[1], (hidden_dim, hidden_dim), hidden_dim),
        "b_ih": u(ks[2], (hidden_dim,), hidden_dim),
        "b_hh": u(ks[3], (hidden_dim,), hidden_dim),
        "w_att": u(ks[4], (1, hidden_dim), hidden_dim),
        "b_att": u(ks[5], (1,), hidden_dim),
        "w1": u(ks[6], (fc_dim, hidden_dim), hidden_dim),
        "b1": u(ks[7], (fc_dim,), hidden_dim),
        "w2": u(ks[8], (output_dim, fc_dim), fc_dim),
        "b2": u(ks[9], (output_dim,), fc_dim),
    }


if __name__ == "__main__":
    B, S, I = 2, 8, 25   # batch, seq_len, input_dim (module default input_dim=25)
    key = jax.random.PRNGKey(0)
    k_x, k_p = jax.random.split(key)
    x = jax.random.normal(k_x, (B, S, I), jnp.float32)
    params = init_params(k_p, input_dim=I, hidden_dim=64, fc_dim=32, output_dim=4)

    # f32 MXU operands: matches the PyTorch f32 module to tight tolerance.
    out = jax.block_until_ready(rnn_classifier_with_attention(x, params))
    ref = jax.block_until_ready(reference_forward(x, params))
    np.testing.assert_allclose(np.asarray(out), np.asarray(ref), rtol=1e-4, atol=1e-4)

    # bf16 MXU operands / f32 accumulation (v5e/v6e/v7x native MXU mode):
    # exercised for compile/run coverage; not held to the 1e-4 f32 tolerance.
    _ = jax.block_until_ready(
        rnn_classifier_with_attention(x, params, mm_dtype=jnp.bfloat16))

    print("KERNEL_OK")
</pallas_src>

<mosaic_0001>
module attributes {stable_mosaic.version = 11 : i64} {
  func.func @rnn_attn_kernel(%arg0: i32, %arg1: memref<8x32x128xf32, #tpu.memory_space<vmem>>, %arg2: memref<64x32xf32, #tpu.memory_space<vmem>>, %arg3: memref<64x64xf32, #tpu.memory_space<vmem>>, %arg4: memref<64x1xf32, #tpu.memory_space<vmem>>, %arg5: memref<64x1xf32, #tpu.memory_space<vmem>>, %arg6: memref<32x64xf32, #tpu.memory_space<vmem>>, %arg7: memref<32x1xf32, #tpu.memory_space<vmem>>, %arg8: memref<4x32xf32, #tpu.memory_space<vmem>>, %arg9: memref<4x1xf32, #tpu.memory_space<vmem>>, %arg10: memref<4x128xf32, #tpu.memory_space<vmem>>, %arg11: memref<8x64x128xf32, #tpu.memory_space<vmem>>, %arg12: memref<8x128xf32, #tpu.memory_space<vmem>>) attributes {dimension_semantics = [#tpu.dimension_semantics<parallel>], iteration_bounds = array<i64: 1>, scalar_prefetch = 0 : i64, scratch_operands = 2 : i64, tpu.core_type = #tpu.core_type<tc>, window_params = [{transform_indices = @transform_0, window_bounds = array<i64: 8, 32, 128>}, {pipeline_mode = #tpu.pipeline_mode<synchronous>, transform_indices = @transform_1, window_bounds = array<i64: 64, 32>}, {pipeline_mode = #tpu.pipeline_mode<synchronous>, transform_indices = @transform_2, window_bounds = array<i64: 64, 64>}, {pipeline_mode = #tpu.pipeline_mode<synchronous>, transform_indices = @transform_3, window_bounds = array<i64: 64, 1>}, {pipeline_mode = #tpu.pipeline_mode<synchronous>, transform_indices = @transform_4, window_bounds = array<i64: 64, 1>}, {pipeline_mode = #tpu.pipeline_mode<synchronous>, transform_indices = @transform_5, window_bounds = array<i64: 32, 64>}, {pipeline_mode = #tpu.pipeline_mode<synchronous>, transform_indices = @transform_6, window_bounds = array<i64: 32, 1>}, {pipeline_mode = #tpu.pipeline_mode<synchronous>, transform_indices = @transform_7, window_bounds = array<i64: 4, 32>}, {pipeline_mode = #tpu.pipeline_mode<synchronous>, transform_indices = @transform_8, window_bounds = array<i64: 4, 1>}, {transform_indices = @transform_9, window_bounds = array<i64: 4, 128>}]} {
    %c0 = arith.constant 0 : index
    %c0_0 = arith.constant 0 : index
    %0 = vector.load %arg2[%c0, %c0_0] : memref<64x32xf32, #tpu.memory_space<vmem>>, vector<64x32xf32>
    %c0_1 = arith.constant 0 : index
    %c0_2 = arith.constant 0 : index
    %1 = vector.load %arg3[%c0_1, %c0_2] : memref<64x64xf32, #tpu.memory_space<vmem>>, vector<64x64xf32>
    %c0_3 = arith.constant 0 : index
    %c0_4 = arith.constant 0 : index
    %2 = vector.load %arg4[%c0_3, %c0_4] : memref<64x1xf32, #tpu.memory_space<vmem>>, vector<64x1xf32>
    %3 = vector.shape_cast %2 : vector<64x1xf32> to vector<64x1xf32>
    %4 = vector.broadcast %3 : vector<64x1xf32> to vector<64x128xf32>
    %c0_5 = arith.constant 0 : index
    %c0_6 = arith.constant 0 : index
    %5 = vector.load %arg5[%c0_5, %c0_6] : memref<64x1xf32, #tpu.memory_space<vmem>>, vector<64x1xf32>
    %6 = vector.shape_cast %5 : vector<64x1xf32> to vector<64x1xf32>
    %7 = vector.broadcast %6 : vector<64x1xf32> to vector<64x128xf32>
    %cst = arith.constant 0.000000e+00 : f32
    %8 = vector.broadcast %cst : f32 to vector<64x128xf32>
    %c0_7 = arith.constant 0 : index
    %c0_8 = arith.constant 0 : index
    %c0_9 = arith.constant 0 : index
    %9 = vector.load %arg1[%c0_7, %c0_8, %c0_9] : memref<8x32x128xf32, #tpu.memory_space<vmem>>, vector<1x32x128xf32>
    %10 = vector.shape_cast %9 : vector<1x32x128xf32> to vector<32x128xf32>
    %cst_10 = arith.constant dense<0.000000e+00> : vector<64x128xf32>
    %11 = tpu.matmul %0, %10, %cst_10 {dimension_numbers = #tpu.dot_dimension_numbers<[1], [0], [0], [1], [0, 0, 1, 1], [], []>} : vector<64x32xf32>, vector<32x128xf32>, vector<64x128xf32> -> vector<64x128xf32>
    %12 = arith.addf %11, %4 : vector<64x128xf32>
    %cst_11 = arith.constant dense<0.000000e+00> : vector<64x128xf32>
    %13 = tpu.matmul %1, %8, %cst_11 {dimension_numbers = #tpu.dot_dimension_numbers<[1], [0], [0], [1], [0, 0, 1, 1], [], []>} : vector<64x64xf32>, vector<64x128xf32>, vector<64x128xf32> -> vector<64x128xf32>
    %14 = arith.addf %12, %13 : vector<64x128xf32>
    %15 = math.tanh %14 : vector<64x128xf32>
    %c0_12 = arith.constant 0 : index
    %c0_13 = arith.constant 0 : index
    %c0_14 = arith.constant 0 : index
    %16 = vector.load %arg11[%c0_12, %c0_13, %c0_14] : memref<8x64x128xf32, #tpu.memory_space<vmem>>, vector<1x64x128xf32>
    %17 = vector.shape_cast %16 : vector<1x64x128xf32> to vector<64x128xf32>
    %18 = vector.shape_cast %15 : vector<64x128xf32> to vector<1x64x128xf32>
    tpu.vector_store %arg11[%c0_12, %c0_13, %c0_14], %18 {strides = array<i32>} : memref<8x64x128xf32, #tpu.memory_space<vmem>>, vector<1x64x128xf32>,
    %19 = arith.mulf %7, %15 : vector<64x128xf32>
    %cst_15 = arith.constant dense<0.000000e+00> : vector<128xf32>
    %20 = vector.multi_reduction <add>, %19, %cst_15 [0] : vector<64x128xf32> to vector<128xf32>
    %21 = vector.shape_cast %20 : vector<128xf32> to vector<1x128xf32>
    %c0_16 = arith.constant 0 : index
    %c0_17 = arith.constant 0 : index
    %22 = vector.load %arg12[%c0_16, %c0_17] : memref<8x128xf32, #tpu.memory_space<vmem>>, vector<1x128xf32>
    tpu.vector_store %arg12[%c0_16, %c0_17], %21 {strides = array<i32>} : memref<8x128xf32, #tpu.memory_space<vmem>>, vector<1x128xf32>,
    %c1 = arith.constant 1 : index
    %c0_18 = arith.constant 0 : index
    %c0_19 = arith.constant 0 : index
    %23 = vector.load %arg1[%c1, %c0_18, %c0_19] : memref<8x32x128xf32, #tpu.memory_space<vmem>>, vector<1x32x128xf32>
    %24 = vector.shape_cast %23 : vector<1x32x128xf32> to vector<32x128xf32>
    %cst_20 = arith.constant dense<0.000000e+00> : vector<64x128xf32>
    %25 = tpu.matmul %0, %24, %cst_20 {dimension_numbers = #tpu.dot_dimension_numbers<[1], [0], [0], [1], [0, 0, 1, 1], [], []>} : vector<64x32xf32>, vector<32x128xf32>, vector<64x128xf32> -> vector<64x128xf32>
    %26 = arith.addf %25, %4 : vector<64x128xf32>
    %cst_21 = arith.constant dense<0.000000e+00> : vector<64x128xf32>
    %27 = tpu.matmul %1, %15, %cst_21 {dimension_numbers = #tpu.dot_dimension_numbers<[1], [0], [0], [1], [0, 0, 1, 1], [], []>} : vector<64x64xf32>, vector<64x128xf32>, vector<64x128xf32> -> vector<64x128xf32>
    %28 = arith.addf %26, %27 : vector<64x128xf32>
    %29 = math.tanh %28 : vector<64x128xf32>
    %c1_22 = arith.constant 1 : index
    %c0_23 = arith.constant 0 : index
    %c0_24 = arith.constant 0 : index
    %30 = vector.load %arg11[%c1_22, %c0_23, %c0_24] : memref<8x64x128xf32, #tpu.memory_space<vmem>>, vector<1x64x128xf32>
    %31 = vector.shape_cast %30 : vector<1x64x128xf32> to vector<64x128xf32>
    %32 = vector.shape_cast %29 : vector<64x128xf32> to vector<1x64x128xf32>
    tpu.vector_store %arg11[%c1_22, %c0_23, %c0_24], %32 {strides = array<i32>} : memref<8x64x128xf32, #tpu.memory_space<vmem>>, vector<1x64x128xf32>,
    %33 = arith.mulf %7, %29 : vector<64x128xf32>
    %cst_25 = arith.constant dense<0.000000e+00> : vector<128xf32>
    %34 = vector.multi_reduction <add>, %33, %cst_25 [0] : vector<64x128xf32> to vector<128xf32>
    %35 = vector.shape_cast %34 : vector<128xf32> to vector<1x128xf32>
    %c1_26 = arith.constant 1 : index
    %c0_27 = arith.constant 0 : index
    %36 = vector.load %arg12[%c1_26, %c0_27] : memref<8x128xf32, #tpu.memory_space<vmem>>, vector<1x128xf32>
    tpu.vector_store %arg12[%c1_26, %c0_27], %35 {strides = array<i32>} : memref<8x128xf32, #tpu.memory_space<vmem>>, vector<1x128xf32>,
    %c2 = arith.constant 2 : index
    %c0_28 = arith.constant 0 : index
    %c0_29 = arith.constant 0 : index
    %37 = vector.load %arg1[%c2, %c0_28, %c0_29] : memref<8x32x128xf32, #tpu.memory_space<vmem>>, vector<1x32x128xf32>
    %38 = vector.shape_cast %37 : vector<1x32x128xf32> to vector<32x128xf32>
    %cst_30 = arith.constant dense<0.000000e+00> : vector<64x128xf32>
    %39 = tpu.matmul %0, %38, %cst_30 {dimension_numbers = #tpu.dot_dimension_numbers<[1], [0], [0], [1], [0, 0, 1, 1], [], []>} : vector<64x32xf32>, vector<32x128xf32>, vector<64x128xf32> -> vector<64x128xf32>
    %40 = arith.addf %39, %4 : vector<64x128xf32>
    %cst_31 = arith.constant dense<0.000000e+00> : vector<64x128xf32>
    %41 = tpu.matmul %1, %29, %cst_31 {dimension_numbers = #tpu.dot_dimension_numbers<[1], [0], [0], [1], [0, 0, 1, 1], [], []>} : vector<64x64xf32>, vector<64x128xf32>, vector<64x128xf32> -> vector<64x128xf32>
    %42 = arith.addf %40, %41 : vector<64x128xf32>
    %43 = math.tanh %42 : vector<64x128xf32>
    %c2_32 = arith.constant 2 : index
    %c0_33 = arith.constant 0 : index
    %c0_34 = arith.constant 0 : index
    %44 = vector.load %arg11[%c2_32, %c0_33, %c0_34] : memref<8x64x128xf32, #tpu.memory_space<vmem>>, vector<1x64x128xf32>
    %45 = vector.shape_cast %44 : vector<1x64x128xf32> to vector<64x128xf32>
    %46 = vector.shape_cast %43 : vector<64x128xf32> to vector<1x64x128xf32>
    tpu.vector_store %arg11[%c2_32, %c0_33, %c0_34], %46 {strides = array<i32>} : memref<8x64x128xf32, #tpu.memory_space<vmem>>, vector<1x64x128xf32>,
    %47 = arith.mulf %7, %43 : vector<64x128xf32>
    %cst_35 = arith.constant dense<0.000000e+00> : vector<128xf32>
    %48 = vector.multi_reduction <add>, %47, %cst_35 [0] : vector<64x128xf32> to vector<128xf32>
    %49 = vector.shape_cast %48 : vector<128xf32> to vector<1x128xf32>
    %c2_36 = arith.constant 2 : index
    %c0_37 = arith.constant 0 : index
    %50 = vector.load %arg12[%c2_36, %c0_37] : memref<8x128xf32, #tpu.memory_space<vmem>>, vector<1x128xf32>
    tpu.vector_store %arg12[%c2_36, %c0_37], %49 {strides = array<i32>} : memref<8x128xf32, #tpu.memory_space<vmem>>, vector<1x128xf32>,
    %c3 = arith.constant 3 : index
    %c0_38 = arith.constant 0 : index
    %c0_39 = arith.constant 0 : index
    %51 = vector.load %arg1[%c3, %c0_38, %c0_39] : memref<8x32x128xf32, #tpu.memory_space<vmem>>, vector<1x32x128xf32>
    %52 = vector.shape_cast %51 : vector<1x32x128xf32> to vector<32x128xf32>
    %cst_40 = arith.constant dense<0.000000e+00> : vector<64x128xf32>
    %53 = tpu.matmul %0, %52, %cst_40 {dimension_numbers = #tpu.dot_dimension_numbers<[1], [0], [0], [1], [0, 0, 1, 1], [], []>} : vector<64x32xf32>, vector<32x128xf32>, vector<64x128xf32> -> vector<64x128xf32>
    %54 = arith.addf %53, %4 : vector<64x128xf32>
    %cst_41 = arith.constant dense<0.000000e+00> : vector<64x128xf32>
    %55 = tpu.matmul %1, %43, %cst_41 {dimension_numbers = #tpu.dot_dimension_numbers<[1], [0], [0], [1], [0, 0, 1, 1], [], []>} : vector<64x64xf32>, vector<64x128xf32>, vector<64x128xf32> -> vector<64x128xf32>
    %56 = arith.addf %54, %55 : vector<64x128xf32>
    %57 = math.tanh %56 : vector<64x128xf32>
    %c3_42 = arith.constant 3 : index
    %c0_43 = arith.constant 0 : index
    %c0_44 = arith.constant 0 : index
    %58 = vector.load %arg11[%c3_42, %c0_43, %c0_44] : memref<8x64x128xf32, #tpu.memory_space<vmem>>, vector<1x64x128xf32>
    %59 = vector.shape_cast %58 : vector<1x64x128xf32> to vector<64x128xf32>
    %60 = vector.shape_cast %57 : vector<64x128xf32> to vector<1x64x128xf32>
    tpu.vector_store %arg11[%c3_42, %c0_43, %c0_44], %60 {strides = array<i32>} : memref<8x64x128xf32, #tpu.memory_space<vmem>>, vector<1x64x128xf32>,
    %61 = arith.mulf %7, %57 : vector<64x128xf32>
    %cst_45 = arith.constant dense<0.000000e+00> : vector<128xf32>
    %62 = vector.multi_reduction <add>, %61, %cst_45 [0] : vector<64x128xf32> to vector<128xf32>
    %63 = vector.shape_cast %62 : vector<128xf32> to vector<1x128xf32>
    %c3_46 = arith.constant 3 : index
    %c0_47 = arith.constant 0 : index
    %64 = vector.load %arg12[%c3_46, %c0_47] : memref<8x128xf32, #tpu.memory_space<vmem>>, vector<1x128xf32>
    tpu.vector_store %arg12[%c3_46, %c0_47], %63 {strides = array<i32>} : memref<8x128xf32, #tpu.memory_space<vmem>>, vector<1x128xf32>,
    %c4 = arith.constant 4 : index
    %c0_48 = arith.constant 0 : index
    %c0_49 = arith.constant 0 : index
    %65 = vector.load %arg1[%c4, %c0_48, %c0_49] : memref<8x32x128xf32, #tpu.memory_space<vmem>>, vector<1x32x128xf32>
    %66 = vector.shape_cast %65 : vector<1x32x128xf32> to vector<32x128xf32>
    %cst_50 = arith.constant dense<0.000000e+00> : vector<64x128xf32>
    %67 = tpu.matmul %0, %66, %cst_50 {dimension_numbers = #tpu.dot_dimension_numbers<[1], [0], [0], [1], [0, 0, 1, 1], [], []>} : vector<64x32xf32>, vector<32x128xf32>, vector<64x128xf32> -> vector<64x128xf32>
    %68 = arith.addf %67, %4 : vector<64x128xf32>
    %cst_51 = arith.constant dense<0.000000e+00> : vector<64x128xf32>
    %69 = tpu.matmul %1, %57, %cst_51 {dimension_numbers = #tpu.dot_dimension_numbers<[1], [0], [0], [1], [0, 0, 1, 1], [], []>} : vector<64x64xf32>, vector<64x128xf32>, vector<64x128xf32> -> vector<64x128xf32>
    %70 = arith.addf %68, %69 : vector<64x128xf32>
    %71 = math.tanh %70 : vector<64x128xf32>
    %c4_52 = arith.constant 4 : index
    %c0_53 = arith.constant 0 : index
    %c0_54 = arith.constant 0 : index
    %72 = vector.load %arg11[%c4_52, %c0_53, %c0_54] : memref<8x64x128xf32, #tpu.memory_space<vmem>>, vector<1x64x128xf32>
    %73 = vector.shape_cast %72 : vector<1x64x128xf32> to vector<64x128xf32>
    %74 = vector.shape_cast %71 : vector<64x128xf32> to vector<1x64x128xf32>
    tpu.vector_store %arg11[%c4_52, %c0_53, %c0_54], %74 {strides = array<i32>} : memref<8x64x128xf32, #tpu.memory_space<vmem>>, vector<1x64x128xf32>,
    %75 = arith.mulf %7, %71 : vector<64x128xf32>
    %cst_55 = arith.constant dense<0.000000e+00> : vector<128xf32>
    %76 = vector.multi_reduction <add>, %75, %cst_55 [0] : vector<64x128xf32> to vector<128xf32>
    %77 = vector.shape_cast %76 : vector<128xf32> to vector<1x128xf32>
    %c4_56 = arith.constant 4 : index
    %c0_57 = arith.constant 0 : index
    %78 = vector.load %arg12[%c4_56, %c0_57] : memref<8x128xf32, #tpu.memory_space<vmem>>, vector<1x128xf32>
    tpu.vector_store %arg12[%c4_56, %c0_57], %77 {strides = array<i32>} : memref<8x128xf32, #tpu.memory_space<vmem>>, vector<1x128xf32>,
    %c5 = arith.constant 5 : index
    %c0_58 = arith.constant 0 : index
    %c0_59 = arith.constant 0 : index
    %79 = vector.load %arg1[%c5, %c0_58, %c0_59] : memref<8x32x128xf32, #tpu.memory_space<vmem>>, vector<1x32x128xf32>
    %80 = vector.shape_cast %79 : vector<1x32x128xf32> to vector<32x128xf32>
    %cst_60 = arith.constant dense<0.000000e+00> : vector<64x128xf32>
    %81 = tpu.matmul %0, %80, %cst_60 {dimension_numbers = #tpu.dot_dimension_numbers<[1], [0], [0], [1], [0, 0, 1, 1], [], []>} : vector<64x32xf32>, vector<32x128xf32>, vector<64x128xf32> -> vector<64x128xf32>
    %82 = arith.addf %81, %4 : vector<64x128xf32>
    %cst_61 = arith.constant dense<0.000000e+00> : vector<64x128xf32>
    %83 = tpu.matmul %1, %71, %cst_61 {dimension_numbers = #tpu.dot_dimension_numbers<[1], [0], [0], [1], [0, 0, 1, 1], [], []>} : vector<64x64xf32>, vector<64x128xf32>, vector<64x128xf32> -> vector<64x128xf32>
    %84 = arith.addf %82, %83 : vector<64x128xf32>
    %85 = math.tanh %84 : vector<64x128xf32>
    %c5_62 = arith.constant 5 : index
    %c0_63 = arith.constant 0 : index
    %c0_64 = arith.constant 0 : index
    %86 = vector.load %arg11[%c5_62, %c0_63, %c0_64] : memref<8x64x128xf32, #tpu.memory_space<vmem>>, vector<1x64x128xf32>
    %87 = vector.shape_cast %86 : vector<1x64x128xf32> to vector<64x128xf32>
    %88 = vector.shape_cast %85 : vector<64x128xf32> to vector<1x64x128xf32>
    tpu.vector_store %arg11[%c5_62, %c0_63, %c0_64], %88 {strides = array<i32>} : memref<8x64x128xf32, #tpu.memory_space<vmem>>, vector<1x64x128xf32>,
    %89 = arith.mulf %7, %85 : vector<64x128xf32>
    %cst_65 = arith.constant dense<0.000000e+00> : vector<128xf32>
    %90 = vector.multi_reduction <add>, %89, %cst_65 [0] : vector<64x128xf32> to vector<128xf32>
    %91 = vector.shape_cast %90 : vector<128xf32> to vector<1x128xf32>
    %c5_66 = arith.constant 5 : index
    %c0_67 = arith.constant 0 : index
    %92 = vector.load %arg12[%c5_66, %c0_67] : memref<8x128xf32, #tpu.memory_space<vmem>>, vector<1x128xf32>
    tpu.vector_store %arg12[%c5_66, %c0_67], %91 {strides = array<i32>} : memref<8x128xf32, #tpu.memory_space<vmem>>, vector<1x128xf32>,
    %c6 = arith.constant 6 : index
    %c0_68 = arith.constant 0 : index
    %c0_69 = arith.constant 0 : index
    %93 = vector.load %arg1[%c6, %c0_68, %c0_69] : memref<8x32x128xf32, #tpu.memory_space<vmem>>, vector<1x32x128xf32>
    %94 = vector.shape_cast %93 : vector<1x32x128xf32> to vector<32x128xf32>
    %cst_70 = arith.constant dense<0.000000e+00> : vector<64x128xf32>
    %95 = tpu.matmul %0, %94, %cst_70 {dimension_numbers = #tpu.dot_dimension_numbers<[1], [0], [0], [1], [0, 0, 1, 1], [], []>} : vector<64x32xf32>, vector<32x128xf32>, vector<64x128xf32> -> vector<64x128xf32>
    %96 = arith.addf %95, %4 : vector<64x128xf32>
    %cst_71 = arith.constant dense<0.000000e+00> : vector<64x128xf32>
    %97 = tpu.matmul %1, %85, %cst_71 {dimension_numbers = #tpu.dot_dimension_numbers<[1], [0], [0], [1], [0, 0, 1, 1], [], []>} : vector<64x64xf32>, vector<64x128xf32>, vector<64x128xf32> -> vector<64x128xf32>
    %98 = arith.addf %96, %97 : vector<64x128xf32>
    %99 = math.tanh %98 : vector<64x128xf32>
    %c6_72 = arith.constant 6 : index
    %c0_73 = arith.constant 0 : index
    %c0_74 = arith.constant 0 : index
    %100 = vector.load %arg11[%c6_72, %c0_73, %c0_74] : memref<8x64x128xf32, #tpu.memory_space<vmem>>, vector<1x64x128xf32>
    %101 = vector.shape_cast %100 : vector<1x64x128xf32> to vector<64x128xf32>
    %102 = vector.shape_cast %99 : vector<64x128xf32> to vector<1x64x128xf32>
    tpu.vector_store %arg11[%c6_72, %c0_73, %c0_74], %102 {strides = array<i32>} : memref<8x64x128xf32, #tpu.memory_space<vmem>>, vector<1x64x128xf32>,
    %103 = arith.mulf %7, %99 : vector<64x128xf32>
    %cst_75 = arith.constant dense<0.000000e+00> : vector<128xf32>
    %104 = vector.multi_reduction <add>, %103, %cst_75 [0] : vector<64x128xf32> to vector<128xf32>
    %105 = vector.shape_cast %104 : vector<128xf32> to vector<1x128xf32>
    %c6_76 = arith.constant 6 : index
    %c0_77 = arith.constant 0 : index
    %106 = vector.load %arg12[%c6_76, %c0_77] : memref<8x128xf32, #tpu.memory_space<vmem>>, vector<1x128xf32>
    tpu.vector_store %arg12[%c6_76, %c0_77], %105 {strides = array<i32>} : memref<8x128xf32, #tpu.memory_space<vmem>>, vector<1x128xf32>,
    %c7 = arith.constant 7 : index
    %c0_78 = arith.constant 0 : index
    %c0_79 = arith.constant 0 : index
    %107 = vector.load %arg1[%c7, %c0_78, %c0_79] : memref<8x32x128xf32, #tpu.memory_space<vmem>>, vector<1x32x128xf32>
    %108 = vector.shape_cast %107 : vector<1x32x128xf32> to vector<32x128xf32>
    %cst_80 = arith.constant dense<0.000000e+00> : vector<64x128xf32>
    %109 = tpu.matmul %0, %108, %cst_80 {dimension_numbers = #tpu.dot_dimension_numbers<[1], [0], [0], [1], [0, 0, 1, 1], [], []>} : vector<64x32xf32>, vector<32x128xf32>, vector<64x128xf32> -> vector<64x128xf32>
    %110 = arith.addf %109, %4 : vector<64x128xf32>
    %cst_81 = arith.constant dense<0.000000e+00> : vector<64x128xf32>
    %111 = tpu.matmul %1, %99, %cst_81 {dimension_numbers = #tpu.dot_dimension_numbers<[1], [0], [0], [1], [0, 0, 1, 1], [], []>} : vector<64x64xf32>, vector<64x128xf32>, vector<64x128xf32> -> vector<64x128xf32>
    %112 = arith.addf %110, %111 : vector<64x128xf32>
    %113 = math.tanh %112 : vector<64x128xf32>
    %c7_82 = arith.constant 7 : index
    %c0_83 = arith.constant 0 : index
    %c0_84 = arith.constant 0 : index
    %114 = vector.load %arg11[%c7_82, %c0_83, %c0_84] : memref<8x64x128xf32, #tpu.memory_space<vmem>>, vector<1x64x128xf32>
    %115 = vector.shape_cast %114 : vector<1x64x128xf32> to vector<64x128xf32>
    %116 = vector.shape_cast %113 : vector<64x128xf32> to vector<1x64x128xf32>
    tpu.vector_store %arg11[%c7_82, %c0_83, %c0_84], %116 {strides = array<i32>} : memref<8x64x128xf32, #tpu.memory_space<vmem>>, vector<1x64x128xf32>,
    %117 = arith.mulf %7, %113 : vector<64x128xf32>
    %cst_85 = arith.constant dense<0.000000e+00> : vector<128xf32>
    %118 = vector.multi_reduction <add>, %117, %cst_85 [0] : vector<64x128xf32> to vector<128xf32>
    %119 = vector.shape_cast %118 : vector<128xf32> to vector<1x128xf32>
    %c7_86 = arith.constant 7 : index
    %c0_87 = arith.constant 0 : index
    %120 = vector.load %arg12[%c7_86, %c0_87] : memref<8x128xf32, #tpu.memory_space<vmem>>, vector<1x128xf32>
    tpu.vector_store %arg12[%c7_86, %c0_87], %119 {strides = array<i32>} : memref<8x128xf32, #tpu.memory_space<vmem>>, vector<1x128xf32>,
    %c0_88 = arith.constant 0 : index
    %c0_89 = arith.constant 0 : index
    %121 = vector.load %arg12[%c0_88, %c0_89] : memref<8x128xf32, #tpu.memory_space<vmem>>, vector<8x128xf32>
    %cst_90 = arith.constant dense<0xFF800000> : vector<128xf32>
    %122 = vector.multi_reduction <maximumf>, %121, %cst_90 [0] : vector<8x128xf32> to vector<128xf32>
    %123 = vector.shape_cast %122 : vector<128xf32> to vector<1x128xf32>
    %124 = vector.broadcast %123 : vector<1x128xf32> to vector<8x128xf32>
    %125 = arith.subf %121, %124 : vector<8x128xf32>
    %126 = math.exp %125 : vector<8x128xf32>
    %cst_91 = arith.constant dense<0.000000e+00> : vector<128xf32>
    %127 = vector.multi_reduction <add>, %126, %cst_91 [0] : vector<8x128xf32> to vector<128xf32>
    %128 = vector.shape_cast %127 : vector<128xf32> to vector<1x128xf32>
    %129 = vector.broadcast %128 : vector<1x128xf32> to vector<8x128xf32>
    %130 = arith.divf %126, %129 : vector<8x128xf32>
    %cst_92 = arith.constant 0.000000e+00 : f32
    %131 = vector.broadcast %cst_92 : f32 to vector<64x128xf32>
    %132 = vector.extract_strided_slice %130 {offsets = [0, 0], sizes = [1, 128], strides = [1, 1]} : vector<8x128xf32> to vector<1x128xf32>
    %c0_93 = arith.constant 0 : index
    %c0_94 = arith.constant 0 : index
    %c0_95 = arith.constant 0 : index
    %133 = vector.load %arg11[%c0_93, %c0_94, %c0_95] : memref<8x64x128xf32, #tpu.memory_space<vmem>>, vector<1x64x128xf32>
    %134 = vector.shape_cast %133 : vector<1x64x128xf32> to vector<64x128xf32>
    %135 = vector.broadcast %132 : vector<1x128xf32> to vector<64x128xf32>
    %136 = arith.mulf %135, %134 : vector<64x128xf32>
    %137 = arith.addf %131, %136 : vector<64x128xf32>
    %138 = vector.extract_strided_slice %130 {offsets = [1, 0], sizes = [1, 128], strides = [1, 1]} : vector<8x128xf32> to vector<1x128xf32>
    %c1_96 = arith.constant 1 : index
    %c0_97 = arith.constant 0 : index
    %c0_98 = arith.constant 0 : index
    %139 = vector.load %arg11[%c1_96, %c0_97, %c0_98] : memref<8x64x128xf32, #tpu.memory_space<vmem>>, vector<1x64x128xf32>
    %140 = vector.shape_cast %139 : vector<1x64x128xf32> to vector<64x128xf32>
    %141 = vector.broadcast %138 : vector<1x128xf32> to vector<64x128xf32>
    %142 = arith.mulf %141, %140 : vector<64x128xf32>
    %143 = arith.addf %137, %142 : vector<64x128xf32>
    %144 = vector.extract_strided_slice %130 {offsets = [2, 0], sizes = [1, 128], strides = [1, 1]} : vector<8x128xf32> to vector<1x128xf32>
    %c2_99 = arith.constant 2 : index
    %c0_100 = arith.constant 0 : index
    %c0_101 = arith.constant 0 : index
    %145 = vector.load %arg11[%c2_99, %c0_100, %c0_101] : memref<8x64x128xf32, #tpu.memory_space<vmem>>, vector<1x64x128xf32>
    %146 = vector.shape_cast %145 : vector<1x64x128xf32> to vector<64x128xf32>
    %147 = vector.broadcast %144 : vector<1x128xf32> to vector<64x128xf32>
    %148 = arith.mulf %147, %146 : vector<64x128xf32>
    %149 = arith.addf %143, %148 : vector<64x128xf32>
    %150 = vector.extract_strided_slice %130 {offsets = [3, 0], sizes = [1, 128], strides = [1, 1]} : vector<8x128xf32> to vector<1x128xf32>
    %c3_102 = arith.constant 3 : index
    %c0_103 = arith.constant 0 : index
    %c0_104 = arith.constant 0 : index
    %151 = vector.load %arg11[%c3_102, %c0_103, %c0_104] : memref<8x64x128xf32, #tpu.memory_space<vmem>>, vector<1x64x128xf32>
    %152 = vector.shape_cast %151 : vector<1x64x128xf32> to vector<64x128xf32>
    %153 = vector.broadcast %150 : vector<1x128xf32> to vector<64x128xf32>
    %154 = arith.mulf %153, %152 : vector<64x128xf32>
    %155 = arith.addf %149, %154 : vector<64x128xf32>
    %156 = vector.extract_strided_slice %130 {offsets = [4, 0], sizes = [1, 128], strides = [1, 1]} : vector<8x128xf32> to vector<1x128xf32>
    %c4_105 = arith.constant 4 : index
    %c0_106 = arith.constant 0 : index
    %c0_107 = arith.constant 0 : index
    %157 = vector.load %arg11[%c4_105, %c0_106, %c0_107] : memref<8x64x128xf32, #tpu.memory_space<vmem>>, vector<1x64x128xf32>
    %158 = vector.shape_cast %157 : vector<1x64x128xf32> to vector<64x128xf32>
    %159 = vector.broadcast %156 : vector<1x128xf32> to vector<64x128xf32>
    %160 = arith.mulf %159, %158 : vector<64x128xf32>
    %161 = arith.addf %155, %160 : vector<64x128xf32>
    %162 = vector.extract_strided_slice %130 {offsets = [5, 0], sizes = [1, 128], strides = [1, 1]} : vector<8x128xf32> to vector<1x128xf32>
    %c5_108 = arith.constant 5 : index
    %c0_109 = arith.constant 0 : index
    %c0_110 = arith.constant 0 : index
    %163 = vector.load %arg11[%c5_108, %c0_109, %c0_110] : memref<8x64x128xf32, #tpu.memory_space<vmem>>, vector<1x64x128xf32>
    %164 = vector.shape_cast %163 : vector<1x64x128xf32> to vector<64x128xf32>
    %165 = vector.broadcast %162 : vector<1x128xf32> to vector<64x128xf32>
    %166 = arith.mulf %165, %164 : vector<64x128xf32>
    %167 = arith.addf %161, %166 : vector<64x128xf32>
    %168 = vector.extract_strided_slice %130 {offsets = [6, 0], sizes = [1, 128], strides = [1, 1]} : vector<8x128xf32> to vector<1x128xf32>
    %c6_111 = arith.constant 6 : index
    %c0_112 = arith.constant 0 : index
    %c0_113 = arith.constant 0 : index
    %169 = vector.load %arg11[%c6_111, %c0_112, %c0_113] : memref<8x64x128xf32, #tpu.memory_space<vmem>>, vector<1x64x128xf32>
    %170 = vector.shape_cast %169 : vector<1x64x128xf32> to vector<64x128xf32>
    %171 = vector.broadcast %168 : vector<1x128xf32> to vector<64x128xf32>
    %172 = arith.mulf %171, %170 : vector<64x128xf32>
    %173 = arith.addf %167, %172 : vector<64x128xf32>
    %174 = vector.extract_strided_slice %130 {offsets = [7, 0], sizes = [1, 128], strides = [1, 1]} : vector<8x128xf32> to vector<1x128xf32>
    %c7_114 = arith.constant 7 : index
    %c0_115 = arith.constant 0 : index
    %c0_116 = arith.constant 0 : index
    %175 = vector.load %arg11[%c7_114, %c0_115, %c0_116] : memref<8x64x128xf32, #tpu.memory_space<vmem>>, vector<1x64x128xf32>
    %176 = vector.shape_cast %175 : vector<1x64x128xf32> to vector<64x128xf32>
    %177 = vector.broadcast %174 : vector<1x128xf32> to vector<64x128xf32>
    %178 = arith.mulf %177, %176 : vector<64x128xf32>
    %179 = arith.addf %173, %178 : vector<64x128xf32>
    %c0_117 = arith.constant 0 : index
    %c0_118 = arith.constant 0 : index
    %180 = vector.load %arg6[%c0_117, %c0_118] : memref<32x64xf32, #tpu.memory_space<vmem>>, vector<32x64xf32>
    %cst_119 = arith.constant dense<0.000000e+00> : vector<32x128xf32>
    %181 = tpu.matmul %180, %179, %cst_119 {dimension_numbers = #tpu.dot_dimension_numbers<[1], [0], [0], [1], [0, 0, 1, 1], [], []>} : vector<32x64xf32>, vector<64x128xf32>, vector<32x128xf32> -> vector<32x128xf32>
    %c0_120 = arith.constant 0 : index
    %c0_121 = arith.constant 0 : index
    %182 = vector.load %arg7[%c0_120, %c0_121] : memref<32x1xf32, #tpu.memory_space<vmem>>, vector<32x1xf32>
    %183 = vector.broadcast %182 : vector<32x1xf32> to vector<32x128xf32>
    %184 = arith.addf %181, %183 : vector<32x128xf32>
    %cst_122 = arith.constant 0.000000e+00 : f32
    %185 = vector.broadcast %cst_122 : f32 to vector<32x128xf32>
    %186 = arith.maximumf %184, %185 : vector<32x128xf32>
    %c0_123 = arith.constant 0 : index
    %c0_124 = arith.constant 0 : index
    %187 = vector.load %arg8[%c0_123, %c0_124] : memref<4x32xf32, #tpu.memory_space<vmem>>, vector<4x32xf32>
    %cst_125 = arith.constant dense<0.000000e+00> : vector<4x128xf32>
    %188 = tpu.matmul %187, %186, %cst_125 {dimension_numbers = #tpu.dot_dimension_numbers<[1], [0], [0], [1], [0, 0, 1, 1], [], []>} : vector<4x32xf32>, vector<32x128xf32>, vector<4x128xf32> -> vector<4x128xf32>
    %c0_126 = arith.constant 0 : index
    %c0_127 = arith.constant 0 : index
    %189 = vector.load %arg9[%c0_126, %c0_127] : memref<4x1xf32, #tpu.memory_space<vmem>>, vector<4x1xf32>
    %190 = vector.broadcast %189 : vector<4x1xf32> to vector<4x128xf32>
    %191 = arith.addf %188, %190 : vector<4x128xf32>
    %c0_128 = arith.constant 0 : index
    %c0_129 = arith.constant 0 : index
    %192 = vector.load %arg10[%c0_128, %c0_129] : memref<4x128xf32, #tpu.memory_space<vmem>>, vector<4x128xf32>
    tpu.vector_store %arg10[%c0_128, %c0_129], %191 {strides = array<i32>} : memref<4x128xf32, #tpu.memory_space<vmem>>, vector<4x128xf32>,
    return
  }
  func.func @transform_0(%arg0: i32) -> (i32, i32, i32) {
    %c0_i32 = arith.constant 0 : i32
    %c0_i32_0 = arith.constant 0 : i32
    %c0_i32_1 = arith.constant 0 : i32
    return %c0_i32, %c0_i32_0, %arg0 : i32, i32, i32
  }
  func.func @transform_1(%arg0: i32) -> (i32, i32) {
    %c0_i32 = arith.constant 0 : i32
    %c0_i32_0 = arith.constant 0 : i32
    %c0_i32_1 = arith.constant 0 : i32
    return %c0_i32, %c0_i32_0 : i32, i32
  }
  func.func @transform_2(%arg0: i32) -> (i32, i32) {
    %c0_i32 = arith.constant 0 : i32
    %c0_i32_0 = arith.constant 0 : i32
    %c0_i32_1 = arith.constant 0 : i32
    return %c0_i32, %c0_i32_0 : i32, i32
  }
  func.func @transform_3(%arg0: i32) -> (i32, i32) {
    %c0_i32 = arith.constant 0 : i32
    %c0_i32_0 = arith.constant 0 : i32
    %c0_i32_1 = arith.constant 0 : i32
    return %c0_i32, %c0_i32_0 : i32, i32
  }
  func.func @transform_4(%arg0: i32) -> (i32, i32) {
    %c0_i32 = arith.constant 0 : i32
    %c0_i32_0 = arith.constant 0 : i32
    %c0_i32_1 = arith.constant 0 : i32
    return %c0_i32, %c0_i32_0 : i32, i32
  }
  func.func @transform_5(%arg0: i32) -> (i32, i32) {
    %c0_i32 = arith.constant 0 : i32
    %c0_i32_0 = arith.constant 0 : i32
    %c0_i32_1 = arith.constant 0 : i32
    return %c0_i32, %c0_i32_0 : i32, i32
  }
  func.func @transform_6(%arg0: i32) -> (i32, i32) {
    %c0_i32 = arith.constant 0 : i32
    %c0_i32_0 = arith.constant 0 : i32
    %c0_i32_1 = arith.constant 0 : i32
    return %c0_i32, %c0_i32_0 : i32, i32
  }
  func.func @transform_7(%arg0: i32) -> (i32, i32) {
    %c0_i32 = arith.constant 0 : i32
    %c0_i32_0 = arith.constant 0 : i32
    %c0_i32_1 = arith.constant 0 : i32
    return %c0_i32, %c0_i32_0 : i32, i32
  }
  func.func @transform_8(%arg0: i32) -> (i32, i32) {
    %c0_i32 = arith.constant 0 : i32
    %c0_i32_0 = arith.constant 0 : i32
    %c0_i32_1 = arith.constant 0 : i32
    return %c0_i32, %c0_i32_0 : i32, i32
  }
  func.func @transform_9(%arg0: i32) -> (i32, i32) {
    %c0_i32 = arith.constant 0 : i32
    %c0_i32_0 = arith.constant 0 : i32
    return %c0_i32, %arg0 : i32, i32
  }
}

</mosaic_0001>

<bundles_post_ra>
// kernel: tpu_custom_call.1
= control target key start
LH: loop header
LB: loop body
LE: loop exit
PB: predicated region body
PF: predicated region fallthrough
CT: control target
= control target key end

     0   :  { %14 = vsyncpa [#allocation5], 0  ;;  %s4976_s0 = inlined_call_operand.vmem [shape: f32[8,32,128], index: 0, kind: input, shape index: {}]   ;;  %s4977_s1 = inlined_call_operand.vmem [shape: f32[64,32], index: 1, kind: input, shape index: {}]   ;;  %s4978_s2 = inlined_call_operand.hbm [shape: f32[64,64], index: 2, kind: input, shape index: {}]   ;;  %s4979_s3 = inlined_call_operand.vmem [shape: f32[64,1], index: 3, kind: input, shape index: {}]   ;;  %s4980_s4 = inlined_call_operand.vmem [shape: f32[64,1], index: 4, kind: input, shape index: {}]   ;;  %s4981_s5 = inlined_call_operand.hbm [shape: f32[32,64], index: 5, kind: input, shape index: {}]   ;;  %s4982_s6 = inlined_call_operand.vmem [shape: f32[32,1], index: 6, kind: input, shape index: {}]   ;;  %s4983_s7 = inlined_call_operand.vmem [shape: f32[4,32], index: 7, kind: input, shape index: {}]   ;;  %s4984_s8 = inlined_call_operand.vmem [shape: f32[4,1], index: 8, kind: input, shape index: {}]   ;;  %s4985_s9 = inlined_call_operand.hbm [shape: f32[4,128], index: 9, kind: output, shape index: {}]  }
   0x1   :  { %15 = vsyncpa [#allocation8], 0 }
   0x2   :  { %16 = vsyncpa [#allocation6], 0  ;;  %s3799_s30 = smov [#allocation4]  }
   0x3   :  { %s26_s10 = sshll.u32 %s3799_s30, 4  ;;  %s27_s10 = int_to_ptr.vmem [resolvable:$true] %s26_s10 }
   0x4   :  { %s3741_s11 = scalar_lea.vmem %s27_s10, 1024  ;;  %p3746_p1 = scmp.lt.s32.totalorder %s27_s10, %s27_s10 }
   0x5   :  { %p3742_p0 = scmp.ne.s32.totalorder %s27_s10, %s3741_s11  ;;  %p3747_p2 = scmp.lt.s32.totalorder %s3741_s11, %s3741_s11 }
   0x7   :  { %p3748_p3 = por %p3747_p2, %p3746_p1 }
   0x9   :  { %p3749_p4 = pnand %p3748_p3, %p3742_p0 }
   0xb   :  { %3752 = shalt.err (!%p3749_p4)
}
   0xc   :  { %s3800_s12 = smov 128   ;;  %s3801_s13 = smov 8  }
   0xd   :  { %32 = dma.hbm_to_vmem [thread:$0]  %s4978_s2, 1024, %s27_s10, [#allocation5], %s3800_s12, %s3800_s12, %s3801_s13  }
   0xe   :  { %s3802_s16 = smov [#allocation7]  }
   0xf   :  { %s42_s17 = sshll.u32 %s3802_s16, 4  ;;  %s43_s17 = int_to_ptr.vmem [resolvable:$true] %s42_s17 }
  0x10   :  { %s3761_s18 = scalar_lea.vmem %s43_s17, 512  ;;  %p3766_p6 = scmp.lt.s32.totalorder %s43_s17, %s43_s17 }
  0x11   :  { %p3762_p5 = scmp.ne.s32.totalorder %s43_s17, %s3761_s18  ;;  %p3767_p7 = scmp.lt.s32.totalorder %s3761_s18, %s3761_s18 }
  0x13   :  { %p3768_p8 = por %p3767_p7, %p3766_p6 }
  0x15   :  { %p3769_p9 = pnand %p3768_p8, %p3762_p5 }
  0x17   :  { %3772 = shalt.err (!%p3769_p9)
}
  0x18   :  { %48 = dma.hbm_to_vmem [thread:$0]  %s4981_s5, 512, %s43_s17, [#allocation8], %s3800_s12, %s3800_s12, %s3801_s13  }
  0x19   :  { %3793 = dma.done.wait [#allocation5], 1024  }
  0x1a   :  { %3794 = vsyncadd [#allocation5], 4294966272 }
  0x1b   :  { %3795 = dma.done.wait [#allocation8], 512  }
  0x1c   :  { %3796 = vsyncadd [#allocation8], 4294966784  ;;  %v4986_v0 = vmov 0.0   ;;  %v3804_v1 = vmov 0   ;;  %vm307_vm0 = vcmask 523264   ;;  %v176_v2 = vld [vmem:[%s4976_s0 + $0x18] sm:$0xff] }
  0x1d   :  { %3200 = vmatprep.subr.mxu1 %v4986_v0  ;;  %3591 = vset.pattern.permute.xlu0 %v3804_v1  ;;  %v3868_v3 = vld [vmem:[#allocation4] sm:$0xff]  ;;  %v3870_v4 = vld [vmem:[#allocation4 + $0x8] sm:$0xff]  ;;  %v3877_v6 = vld [vmem:[#allocation4 + $0x10] sm:$0xff]  ;;  %vm177_vm1 = vcmask 261120   ;;  %vm3805_vm2 = vmmov 0   ;;  %s3806_s19 = smov [#allocation9]  }
  0x1e   :  { %3201 = vmatpush3.msra.mxu1 %v4986_v0  ;;  %3592 = vset.pattern.permute.xlu1 %v3804_v1  ;;  %v175_v5 = vld [vmem:[%s4976_s0 + $0x10] sm:$0xff]  ;;  %v174_v7 = vld [vmem:[%s4976_s0 + $0x8] sm:$0xff]  ;;  %v3887_v8 = vld [vmem:[%s4977_s1] sm:$0xff]  ;;  %s2775_s20 = sshll.u32 %s3806_s19, 4  ;;  %s2776_s20 = int_to_ptr.vmem [resolvable:$true] %s2775_s20 }
  0x1f   :  { %3180 = vmatprep.subr.mxu0 %v176_v2  ;;  %3202 = vmatprep.mubr.msk.f32.mxu1 %vm307_vm0, %v3868_v3  ;;  %v3891_v9 = vld [vmem:[#allocation4 + $0x18] sm:$0xff]  ;;  %v3898_v11 = vld [vmem:[#allocation4 + $0x20] sm:$0xff]  ;;  %v2804_v12 = vld [vmem:[%s4976_s0 + $0x38] sm:$0xff]  ;;  %p3778_p11 = scmp.lt.s32.totalorder %s2776_s20, %s2776_s20 }
  0x20   :  { %3181 = vmatpush3.msra.mxu0 %v176_v2  ;;  %3203 = vmatmul.mubr.msk.f32.vlgmr.msra.gmra.mxu1 %vm307_vm0, %v3870_v4  ;;  %v173_v10 = vld [vmem:[%s4976_s0] sm:$0xff]  ;;  %v3908_v13 = vld [vmem:[%s4977_s1 + $0x8] sm:$0xff]  ;;  %v2803_v14 = vld [vmem:[%s4976_s0 + $0x30] sm:$0xff] }
  0x21   :  { %3182 = vmatprep.subr.mxu0 %v175_v5  ;;  %3205 = vmatprep.mubr.msk.f32.mxu1 %vm307_vm0, %v3877_v6  ;;  %v3915_v15 = vld [vmem:[#allocation4 + $0x28] sm:$0xff]  ;;  %v3922_v17 = vld [vmem:[#allocation4 + $0x30] sm:$0xff]  ;;  %v2802_v18 = vld [vmem:[%s4976_s0 + $0x28] sm:$0xff] }
  0x22   :  { %3183 = vmatpush3.msra.mxu0 %v175_v5  ;;  %3188 = vmatprep.mubr.msk.f32.mxu0 %vm177_vm1, %v3887_v8  ;;  %v3920_v16 = vld [vmem:[%s4977_s1 + $0x10] sm:$0xff]  ;;  %v3936_v19 = vld [vmem:[%s4977_s1 + $0x18] sm:$0xff]  ;;  %v3943_v21 = vld [vmem:[#allocation4 + $0x38] sm:$0xff] }
  0x23   :  { %3184 = vmatprep.subr.mxu0 %v174_v7  ;;  %3214 = vmatprep.subr.mxu1 %v2804_v12  ;;  %v84_v20 = vld [vmem:[%s4979_s3 + $0x38] sm:$0xff]  ;;  %v3948_v22 = vld [vmem:[%s4977_s1 + $0x20] sm:$0xff]  ;;  %v83_v24 = vld [vmem:[%s4979_s3 + $0x30] sm:$0xff] }
  0x24   :  { %3185 = vmatpush3.msra.mxu0 %v174_v7  ;;  %3206 = vmatmul.mubr.msk.f32.gmra.mxu1 %vm307_vm0, %v3891_v9  ;;  %v2801_v23 = vld [vmem:[%s4976_s0 + $0x20] sm:$0xff]  ;;  %v3965_v25 = vld [vmem:[%s4977_s1 + $0x28] sm:$0xff]  ;;  %v2824_v26 = vld [vmem:[%s4976_s0 + $0x58] sm:$0xff] }
  0x25   :  { %3186 = vmatprep.subr.mxu0 %v173_v10  ;;  %3208 = vmatprep.mubr.msk.f32.mxu1 %vm307_vm0, %v3898_v11  ;;  %v3975_v27 = vld [vmem:[%s4977_s1 + $0x30] sm:$0xff]  ;;  %v82_v29 = vld [vmem:[%s4979_s3 + $0x28] sm:$0xff]  ;;  %v3992_v30 = vld [vmem:[%s4977_s1 + $0x38] sm:$0xff]  ;;  %s3773_s1 = scalar_lea.vmem %s2776_s20, 64 }
  0x26   :  { %3187 = vmatpush3.msra.mxu0 %v173_v10  ;;  %3215 = vmatpush3.msra.mxu1 %v2804_v12  ;;  %v2823_v28 = vld [vmem:[%s4976_s0 + $0x50] sm:$0xff]  ;;  %v2822_v31 = vld [vmem:[%s4976_s0 + $0x48] sm:$0xff]  ;;  %v2821_v32 = vld [vmem:[%s4976_s0 + $0x40] sm:$0xff]  ;;  %p3774_p10 = scmp.ne.s32.totalorder %s2776_s20, %s3773_s1  ;;  %p3779_p12 = scmp.lt.s32.totalorder %s3773_s1, %s3773_s1 }
  0x27   :  { %3189 = vmatmul.mubr.msk.f32.vlgmr.msra.gmra.mxu0 %vm177_vm1, %v3908_v13  ;;  %3216 = vmatprep.subr.mxu1 %v2803_v14  ;;  %v80_v33 = vld [vmem:[%s4979_s3 + $0x18] sm:$0xff]  ;;  %v81_v34 = vld [vmem:[%s4979_s3 + $0x20] sm:$0xff]  ;;  %v78_v36 = vld [vmem:[%s4979_s3 + $0x8] sm:$0xff] }
  0x28   :  { %3209 = vmatmul.mubr.msk.f32.gmra.mxu1 %vm307_vm0, %v3915_v15  ;;  %3191 = vmatprep.mubr.msk.f32.mxu0 %vm177_vm1, %v3920_v16  ;;  %v2844_v35 = vld [vmem:[%s4976_s0 + $0x78] sm:$0xff]  ;;  %v79_v37 = vld [vmem:[%s4979_s3 + $0x10] sm:$0xff]  ;;  %v125_v38 = vld [vmem:[%s4980_s4] sm:$0xff]  ;;  %p3780_p13 = por %p3779_p12, %p3778_p11 }
  0x29   :  { %3211 = vmatprep.mubr.msk.f32.mxu1 %vm307_vm0, %v3922_v17  ;;  %3217 = vmatpush3.msra.mxu1 %v2803_v14  ;;  %v77_v39 = vld [vmem:[%s4979_s3] sm:$0xff]  ;;  %v2843_v40 = vld [vmem:[%s4976_s0 + $0x70] sm:$0xff]  ;;  %v126_v42 = vld [vmem:[%s4980_s4 + $0x8] sm:$0xff] }
  0x2a   :  { %3218 = vmatprep.subr.mxu1 %v2802_v18  ;;  %122 = vperm.xlu0 %3591, %v84_v20   ;;  %v127_v41 = vld [vmem:[%s4980_s4 + $0x10] sm:$0xff]  ;;  %v2842_v43 = vld [vmem:[%s4976_s0 + $0x68] sm:$0xff]  ;;  %v2841_v44 = vld [vmem:[%s4976_s0 + $0x60] sm:$0xff]  ;;  %p3781_p0 = pnand %p3780_p13, %p3774_p10 }
  0x2b   :  { %3192 = vmatmul.mubr.msk.f32.gmra.mxu0 %vm177_vm1, %v3936_v19  ;;  %3219 = vmatpush3.msra.mxu1 %v2802_v18  ;;  %v129_v45 = vld [vmem:[%s4980_s4 + $0x20] sm:$0xff]  ;;  %v128_v46 = vld [vmem:[%s4980_s4 + $0x18] sm:$0xff]  ;;  %v131_v48 = vld [vmem:[%s4980_s4 + $0x30] sm:$0xff] }
  0x2c   :  { %3212 = vmatmul.mubr.msk.f32.gmra.mxu1 %vm307_vm0, %v3943_v21  ;;  %3194 = vmatprep.mubr.msk.f32.mxu0 %vm177_vm1, %v3948_v22  ;;  %v2864_v47 = vld [vmem:[%s4976_s0 + $0x98] sm:$0xff]  ;;  %v130_v49 = vld [vmem:[%s4980_s4 + $0x28] sm:$0xff]  ;;  %v2863_v52 = vld [vmem:[%s4976_s0 + $0x90] sm:$0xff] }
  0x2d   :  { %3220 = vmatprep.subr.mxu1 %v2801_v23  ;;  %3222 = vmatprep.mubr.msk.f32.mxu1 %vm177_vm1, %v3887_v8  ;;  %v2566_v50 = vld [vmem:[%s4982_s6 + $0x18] sm:$0xff]  ;;  %v2564_v53 = vld [vmem:[%s4982_s6 + $0x8] sm:$0xff]  ;;  %v2565_v54 = vld [vmem:[%s4982_s6 + $0x10] sm:$0xff] }
  0x2e   :  { %3221 = vmatpush3.msra.mxu1 %v2801_v23  ;;  %117 = vperm.xlu0 %3591, %v83_v24   ;;  %v132_v51 = vld [vmem:[%s4980_s4 + $0x38] sm:$0xff]  ;;  %v2862_v55 = vld [vmem:[%s4976_s0 + $0x88] sm:$0xff]  ;;  %v2861_v56 = vld [vmem:[%s4976_s0 + $0x80] sm:$0xff] }
  0x2f   :  { %3195 = vmatmul.mubr.msk.f32.gmra.mxu0 %vm177_vm1, %v3965_v25  ;;  %3262 = vmatprep.subr.mxu1 %v2824_v26  ;;  %v2689_v57 = vld [vmem:[%s4984_s8] sm:$0xf]  ;;  %v2884_v59 = vld [vmem:[%s4976_s0 + $0xb8] sm:$0xff]  ;;  %v2883_v60 = vld [vmem:[%s4976_s0 + $0xb0] sm:$0xff] }
  0x30   :  { %3223 = vmatmul.mubr.msk.f32.vlgmr.msra.gmra.mxu1 %vm177_vm1, %v3908_v13  ;;  %3197 = vmatprep.mubr.msk.f32.mxu0 %vm177_vm1, %v3975_v27  ;;  %v2563_v58 = vld [vmem:[%s4982_s6] sm:$0xff]  ;;  %v2882_v61 = vld [vmem:[%s4976_s0 + $0xa8] sm:$0xff]  ;;  %v2904_v63 = vld [vmem:[%s4976_s0 + $0xd8] sm:$0xff] }
  0x31   :  { %3225 = vmatprep.mubr.msk.f32.mxu1 %vm177_vm1, %v3920_v16  ;;  %3263 = vmatpush3.msra.mxu1 %v2824_v26  ;;  %v2881_v62 = vld [vmem:[%s4976_s0 + $0xa0] sm:$0xff]  ;;  %v2903_v1 = vld [vmem:[%s4976_s0 + $0xd0] sm:$0xff]  ;;  %v2902_v2 = vld [vmem:[%s4976_s0 + $0xc8] sm:$0xff] }
  0x32   :  { %3264 = vmatprep.subr.mxu1 %v2823_v28  ;;  %112 = vperm.xlu1 %3592, %v82_v29   ;;  %v2901_v5 = vld [vmem:[%s4976_s0 + $0xc0] sm:$0xff]  ;;  %v2924_v7 = vld [vmem:[%s4976_s0 + $0xf8] sm:$0xff]  ;;  %v2923_v10 = vld [vmem:[%s4976_s0 + $0xf0] sm:$0xff] }
  0x33   :  { %3198 = vmatmul.mubr.msk.f32.gmra.mxu0 %vm177_vm1, %v3992_v30  ;;  %3265 = vmatpush3.msra.mxu1 %v2823_v28  ;;  %v2922_v12 = vld [vmem:[%s4976_s0 + $0xe8] sm:$0xff]  ;;  %v2921_v14 = vld [vmem:[%s4976_s0 + $0xe0] sm:$0xff] }
  0x34   :  { %3226 = vmatmul.mubr.msk.f32.gmra.mxu1 %vm177_vm1, %v3936_v19  ;;  %3266 = vmatprep.subr.mxu1 %v2822_v31 }
  0x35   :  { %3228 = vmatprep.mubr.msk.f32.mxu1 %vm177_vm1, %v3948_v22  ;;  %3267 = vmatpush3.msra.mxu1 %v2822_v31 }
  0x36   :  { %3268 = vmatprep.subr.mxu1 %v2821_v32  ;;  %102 = vperm.xlu0 %3591, %v80_v33  }
  0x37   :  { %3269 = vmatpush3.msra.mxu1 %v2821_v32  ;;  %107 = vperm.xlu1 %3592, %v81_v34  }
  0x38   :  { %3229 = vmatmul.mubr.msk.f32.gmra.mxu1 %vm177_vm1, %v3965_v25  ;;  %3310 = vmatprep.subr.mxu1 %v2844_v35 }
  0x39   :  { %3231 = vmatprep.mubr.msk.f32.mxu1 %vm177_vm1, %v3975_v27  ;;  %3250 = vmatprep.mubr.msk.f32.mxu0 %vm307_vm0, %v3868_v3 }
  0x3a   :  { %92 = vperm.xlu0 %3591, %v78_v36  }
  0x3b   :  { %97 = vperm.xlu1 %3592, %v79_v37  }
  0x3c   :  { %3232 = vmatmul.mubr.msk.f32.gmra.mxu1 %vm177_vm1, %v3992_v30 }
  0x3d   :  { %3270 = vmatprep.mubr.msk.f32.mxu1 %vm177_vm1, %v3887_v8 }
  0x3e   :  { %135 = vperm.xlu0 %3591, %v125_v38  }
  0x3f   :  { %87 = vperm.xlu1 %3592, %v77_v39  }
  0x40   :  { %3271 = vmatmul.mubr.msk.f32.vlgmr.msra.gmra.mxu1 %vm177_vm1, %v3908_v13 }
  0x41   :  { %3273 = vmatprep.mubr.msk.f32.mxu1 %vm177_vm1, %v3920_v16  ;;  %3311 = vmatpush3.msra.mxu1 %v2844_v35 }
  0x42   :  { %3312 = vmatprep.subr.mxu1 %v2843_v40  ;;  %145 = vperm.xlu0 %3591, %v127_v41  }
  0x43   :  { %3313 = vmatpush3.msra.mxu1 %v2843_v40  ;;  %140 = vperm.xlu1 %3592, %v126_v42  }
  0x44   :  { %3274 = vmatmul.mubr.msk.f32.gmra.mxu1 %vm177_vm1, %v3936_v19  ;;  %3314 = vmatprep.subr.mxu1 %v2842_v43 }
  0x45   :  { %3276 = vmatprep.mubr.msk.f32.mxu1 %vm177_vm1, %v3948_v22  ;;  %3315 = vmatpush3.msra.mxu1 %v2842_v43 }
  0x46   :  { %3316 = vmatprep.subr.mxu1 %v2841_v44  ;;  %155 = vperm.xlu0 %3591, %v129_v45  }
  0x47   :  { %3317 = vmatpush3.msra.mxu1 %v2841_v44  ;;  %150 = vperm.xlu1 %3592, %v128_v46  }
  0x48   :  { %3277 = vmatmul.mubr.msk.f32.gmra.mxu1 %vm177_vm1, %v3965_v25  ;;  %3358 = vmatprep.subr.mxu1 %v2864_v47 }
  0x49   :  { %3279 = vmatprep.mubr.msk.f32.mxu1 %vm177_vm1, %v3975_v27 }
  0x4a   :  { %165 = vperm.xlu0 %3591, %v131_v48  }
  0x4b   :  { %160 = vperm.xlu1 %3592, %v130_v49  }
  0x4c   :  { %3280 = vmatmul.mubr.msk.f32.gmra.mxu1 %vm177_vm1, %v3992_v30 }
  0x4d   :  { %3318 = vmatprep.mubr.msk.f32.mxu1 %vm177_vm1, %v3887_v8 }
  0x4e   :  { %2584 = vperm.xlu0 %3591, %v2566_v50  }
  0x4f   :  { %170 = vperm.xlu1 %3592, %v132_v51  }
  0x50   :  { %3319 = vmatmul.mubr.msk.f32.vlgmr.msra.gmra.mxu1 %vm177_vm1, %v3908_v13 }
  0x51   :  { %3321 = vmatprep.mubr.msk.f32.mxu1 %vm177_vm1, %v3920_v16  ;;  %3359 = vmatpush3.msra.mxu1 %v2864_v47 }
  0x52   :  { %3360 = vmatprep.subr.mxu1 %v2863_v52  ;;  %2574 = vperm.xlu0 %3591, %v2564_v53  }
  0x53   :  { %3361 = vmatpush3.msra.mxu1 %v2863_v52  ;;  %2579 = vperm.xlu1 %3592, %v2565_v54  }
  0x54   :  { %3322 = vmatmul.mubr.msk.f32.gmra.mxu1 %vm177_vm1, %v3936_v19  ;;  %3362 = vmatprep.subr.mxu1 %v2862_v55 }
  0x55   :  { %3324 = vmatprep.mubr.msk.f32.mxu1 %vm177_vm1, %v3948_v22  ;;  %3363 = vmatpush3.msra.mxu1 %v2862_v55 }
  0x56   :  { %3364 = vmatprep.subr.mxu1 %v2861_v56  ;;  %2692 = vperm.xlu0 %3591, %v2689_v57  }
  0x57   :  { %3365 = vmatpush3.msra.mxu1 %v2861_v56  ;;  %2569 = vperm.xlu1 %3592, %v2563_v58  }
  0x58   :  { %3325 = vmatmul.mubr.msk.f32.gmra.mxu1 %vm177_vm1, %v3965_v25  ;;  %3406 = vmatprep.subr.mxu1 %v2884_v59 }
  0x59   :  { %3327 = vmatprep.mubr.msk.f32.mxu1 %vm177_vm1, %v3975_v27 }
  0x5c   :  { %3328 = vmatmul.mubr.msk.f32.gmra.mxu1 %vm177_vm1, %v3992_v30 }
  0x5d   :  { %3366 = vmatprep.mubr.msk.f32.mxu1 %vm177_vm1, %v3887_v8 }
  0x60   :  { %3367 = vmatmul.mubr.msk.f32.vlgmr.msra.gmra.mxu1 %vm177_vm1, %v3908_v13 }
  0x61   :  { %3369 = vmatprep.mubr.msk.f32.mxu1 %vm177_vm1, %v3920_v16  ;;  %3407 = vmatpush3.msra.mxu1 %v2884_v59 }
  0x62   :  { %3408 = vmatprep.subr.mxu1 %v2883_v60 }
  0x63   :  { %3409 = vmatpush3.msra.mxu1 %v2883_v60 }
  0x64   :  { %3370 = vmatmul.mubr.msk.f32.gmra.mxu1 %vm177_vm1, %v3936_v19  ;;  %3410 = vmatprep.subr.mxu1 %v2882_v61 }
  0x65   :  { %3372 = vmatprep.mubr.msk.f32.mxu1 %vm177_vm1, %v3948_v22  ;;  %3411 = vmatpush3.msra.mxu1 %v2882_v61 }
  0x66   :  { %3412 = vmatprep.subr.mxu1 %v2881_v62 }
  0x67   :  { %3413 = vmatpush3.msra.mxu1 %v2881_v62 }
  0x68   :  { %3373 = vmatmul.mubr.msk.f32.gmra.mxu1 %vm177_vm1, %v3965_v25  ;;  %3454 = vmatprep.subr.mxu1 %v2904_v63 }
  0x69   :  { %3375 = vmatprep.mubr.msk.f32.mxu1 %vm177_vm1, %v3975_v27 }
  0x6c   :  { %3376 = vmatmul.mubr.msk.f32.gmra.mxu1 %vm177_vm1, %v3992_v30 }
  0x6d   :  { %3414 = vmatprep.mubr.msk.f32.mxu1 %vm177_vm1, %v3887_v8 }
  0x70   :  { %3415 = vmatmul.mubr.msk.f32.vlgmr.msra.gmra.mxu1 %vm177_vm1, %v3908_v13 }
  0x71   :  { %3417 = vmatprep.mubr.msk.f32.mxu1 %vm177_vm1, %v3920_v16  ;;  %3455 = vmatpush3.msra.mxu1 %v2904_v63 }
  0x72   :  { %3456 = vmatprep.subr.mxu1 %v2903_v1 }
  0x73   :  { %3457 = vmatpush3.msra.mxu1 %v2903_v1 }
  0x74   :  { %3418 = vmatmul.mubr.msk.f32.gmra.mxu1 %vm177_vm1, %v3936_v19  ;;  %3458 = vmatprep.subr.mxu1 %v2902_v2 }
  0x75   :  { %3420 = vmatprep.mubr.msk.f32.mxu1 %vm177_vm1, %v3948_v22  ;;  %3459 = vmatpush3.msra.mxu1 %v2902_v2 }
  0x76   :  { %3460 = vmatprep.subr.mxu1 %v2901_v5 }
  0x77   :  { %3461 = vmatpush3.msra.mxu1 %v2901_v5 }
  0x78   :  { %3421 = vmatmul.mubr.msk.f32.gmra.mxu1 %vm177_vm1, %v3965_v25  ;;  %3502 = vmatprep.subr.mxu1 %v2924_v7 }
  0x79   :  { %3423 = vmatprep.mubr.msk.f32.mxu1 %vm177_vm1, %v3975_v27 }
  0x7c   :  { %3424 = vmatmul.mubr.msk.f32.gmra.mxu1 %vm177_vm1, %v3992_v30 }
  0x7d   :  { %3462 = vmatprep.mubr.msk.f32.mxu1 %vm177_vm1, %v3887_v8 }
  0x80   :  { %3463 = vmatmul.mubr.msk.f32.vlgmr.msra.gmra.mxu1 %vm177_vm1, %v3908_v13 }
  0x81   :  { %3465 = vmatprep.mubr.msk.f32.mxu1 %vm177_vm1, %v3920_v16  ;;  %3503 = vmatpush3.msra.mxu1 %v2924_v7 }
  0x82   :  { %3504 = vmatprep.subr.mxu1 %v2923_v10 }
  0x83   :  { %3505 = vmatpush3.msra.mxu1 %v2923_v10 }
  0x84   :  { %3466 = vmatmul.mubr.msk.f32.gmra.mxu1 %vm177_vm1, %v3936_v19  ;;  %3506 = vmatprep.subr.mxu1 %v2922_v12 }
  0x85   :  { %3468 = vmatprep.mubr.msk.f32.mxu1 %vm177_vm1, %v3948_v22  ;;  %3507 = vmatpush3.msra.mxu1 %v2922_v12 }
  0x86   :  { %3508 = vmatprep.subr.mxu1 %v2921_v14 }
  0x87   :  { %3509 = vmatpush3.msra.mxu1 %v2921_v14 }
  0x88   :  { %3469 = vmatmul.mubr.msk.f32.gmra.mxu1 %vm177_vm1, %v3965_v25 }
  0x89   :  { %3471 = vmatprep.mubr.msk.f32.mxu1 %vm177_vm1, %v3975_v27 }
  0x8c   :  { %3472 = vmatmul.mubr.msk.f32.gmra.mxu1 %vm177_vm1, %v3992_v30 }
  0x8d   :  { %3510 = vmatprep.mubr.msk.f32.mxu1 %vm177_vm1, %v3887_v8 }
  0x90   :  { %3511 = vmatmul.mubr.msk.f32.vlgmr.msra.gmra.mxu1 %vm177_vm1, %v3908_v13 }
  0x91   :  { %3513 = vmatprep.mubr.msk.f32.mxu1 %vm177_vm1, %v3920_v16 }
  0x94   :  { %3514 = vmatmul.mubr.msk.f32.gmra.mxu1 %vm177_vm1, %v3936_v19 }
  0x95   :  { %3516 = vmatprep.mubr.msk.f32.mxu1 %vm177_vm1, %v3948_v22 }
  0x98   :  { %3517 = vmatmul.mubr.msk.f32.gmra.mxu1 %vm177_vm1, %v3965_v25 }
  0x99   :  { %3519 = vmatprep.mubr.msk.f32.mxu1 %vm177_vm1, %v3975_v27 }
  0x9c   :  { %3520 = vmatmul.mubr.msk.f32.gmra.mxu1 %vm177_vm1, %v3992_v30 }
  0xa5   :  { %v4226_v8 = vpop.permute.xlu0 %122 }
  0xa9   :  { %v4230_v16 = vpop.permute.xlu0 %117 }
  0xad   :  { %v4228_v13 = vpop.permute.xlu1 %112 }
  0xb1   :  { %v4234_v19 = vpop.permute.xlu0 %102 }
  0xb2   :  { %v4232_v18 = vpop.permute.xlu1 %107 }
  0xb5   :  { %v4238_v25 = vpop.permute.xlu0 %92 }
  0xb6   :  { %v4236_v23 = vpop.permute.xlu1 %97 }
  0xb9   :  { %v4249_v51 = vpop.permute.xlu0 %135 }
  0xba   :  { %v4241_v29 = vpop.permute.xlu1 %87 }
  0xbd   :  { %v4258_v60 = vpop.permute.xlu0 %145 }
  0xbe   :  { %v4252_v55 = vpop.permute.xlu1 %140 }
  0xc1   :  { %v4272_v10 = vpop.permute.xlu0 %155 }
  0xc2   :  { %v4262_v62 = vpop.permute.xlu1 %150 }
  0xe0   :  { %v3204_v20 = vpop.f32.mrf.mxu1 }
  0xe2   :  { %v398_v22 = vpop.f32.mrf.mxu1 }
  0xe4   :  { %v3207_v24 = vpop.f32.mrf.mxu1 }
  0xe6   :  { %v408_v26 = vpop.f32.mrf.mxu1 }
  0xe7   :  { %v3190_v27 = vpop.f32.mrf.mxu0 }
  0xe8   :  { %v274_v28 = vadd.f32 %v3190_v27, %v4238_v25  ;;  %v3210_v33 = vpop.f32.mrf.mxu1 }
  0xe9   :  { %v268_v30 = vpop.f32.mrf.mxu0 }
  0xea   :  { %v438_v31 = vadd.f32 %v3204_v20, %v274_v28  ;;  %v269_v32 = vadd.f32 %v268_v30, %v4241_v29  ;;  %v418_v40 = vpop.f32.mrf.mxu1 }
  0xeb   :  { %v3193_v34 = vpop.f32.mrf.mxu0 }
  0xec   :  { %v437_v35 = vadd.f32 %v398_v22, %v269_v32  ;;  %v284_v36 = vadd.f32 %v3193_v34, %v4234_v19  ;;  %3593 = vtanh.f32 %v438_v31  ;;  %v3213_v47 = vpop.f32.mrf.mxu1 }
  0xed   :  { %v278_v37 = vpop.f32.mrf.mxu0 }
  0xee   :  { %3595 = vtanh.f32 %v437_v35  ;;  %v440_v38 = vadd.f32 %v3207_v24, %v284_v36  ;;  %v279_v39 = vadd.f32 %v278_v37, %v4236_v23  ;;  %v428_v56 = vpop.f32.mrf.mxu1  ;;  %v4280_v24 = vpop.permute.xlu1 %160 }
  0xef   :  { %v3196_v41 = vpop.f32.mrf.mxu0 }
  0xf0   :  { %v439_v42 = vadd.f32 %v408_v26, %v279_v39  ;;  %v294_v43 = vadd.f32 %v3196_v41, %v4228_v13  ;;  %3597 = vtanh.f32 %v440_v38 }
  0xf1   :  { %v288_v44 = vpop.f32.mrf.mxu0 }
  0xf2   :  { %3599 = vtanh.f32 %v439_v42  ;;  %v442_v45 = vadd.f32 %v3210_v33, %v294_v43  ;;  %v289_v46 = vadd.f32 %v288_v44, %v4232_v18  ;;  %v4291_v33 = vpop.permute.xlu0 %165  ;;  %v4297_v36 = vpop.permute.xlu1 %170 }
  0xf3   :  { %v3199_v48 = vpop.f32.mrf.mxu0 }
  0xf4   :  { %v441_v49 = vadd.f32 %v418_v40, %v289_v46  ;;  %v304_v50 = vadd.f32 %v3199_v48, %v4226_v8  ;;  %3601 = vtanh.f32 %v442_v45  ;;  %v3224_v46 = vpop.f32.mrf.mxu1 }
  0xf5   :  { %v298_v52 = vpop.f32.mrf.mxu0 }
  0xf6   :  { %3603 = vtanh.f32 %v441_v49  ;;  %v444_v53 = vadd.f32 %v3213_v47, %v304_v50  ;;  %v299_v54 = vadd.f32 %v298_v52, %v4230_v16  ;;  %v554_v47 = vpop.f32.mrf.mxu1  ;;  %v560_v52 = vadd.f32 %v3224_v46, %v4238_v25 }
  0xf8   :  { %3605 = vtanh.f32 %v444_v53  ;;  %v443_v57 = vadd.f32 %v428_v56, %v299_v54  ;;  %v3227_v48 = vpop.f32.mrf.mxu1  ;;  %v555_v54 = vadd.f32 %v554_v47, %v4241_v29 }
  0xf9   :  { %v4254_v58 = vpop.eup %3593 }
  0xfa   :  { %5015 = vst [vmem:[#allocation13_spill] sm:$0xff] %v4254_v58  ;;  %3607 = vtanh.f32 %v443_v57  ;;  %v462_v1 = vmul.f32 %v4254_v58, %v4252_v55  ;;  %v564_v49 = vpop.f32.mrf.mxu1 }
  0xfb   :  { %v4256_v59 = vpop.eup %3595 }
  0xfc   :  { %5016 = vst [vmem:[#allocation14_spill] sm:$0xff] %v4256_v59  ;;  %v461_v61 = vmul.f32 %v4256_v59, %v4249_v51  ;;  %v3230_v50 = vpop.f32.mrf.mxu1 }
  0xfd   :  { %v4264_v63 = vpop.eup %3597 }
  0xfe   :  { %5017 = vst [vmem:[#allocation15_spill] sm:$0xff] %v4264_v63  ;;  %v469_v5 = vadd.f32 %v462_v1, %v461_v61  ;;  %v464_v14 = vmul.f32 %v4264_v63, %v4262_v62  ;;  %v574_v57 = vpop.f32.mrf.mxu1  ;;  %v570_v1 = vadd.f32 %v3227_v48, %v4234_v19 }
  0xff   :  { %v4268_v2 = vpop.eup %3599 }
 0x100   :  { %5018 = vst [vmem:[#allocation16_spill] sm:$0xff] %v4268_v2  ;;  %v463_v7 = vmul.f32 %v4268_v2, %v4258_v60 }
 0x101   :  { %v4274_v12 = vpop.eup %3601 }
 0x102   :  { %v470_v20 = vadd.f32 %v469_v5, %v463_v7  ;;  %v466_v30 = vmul.f32 %v4274_v12, %v4280_v24 }
 0x103   :  { %v4278_v22 = vpop.eup %3603 }
 0x104   :  { %v465_v26 = vmul.f32 %v4278_v22, %v4272_v10  ;;  %v471_v27 = vadd.f32 %v470_v20, %v464_v14  ;;  %v565_v14 = vadd.f32 %v564_v49, %v4236_v23 }
 0x105   :  { %v4284_v28 = vpop.eup %3605 }
 0x106   :  { %v472_v31 = vadd.f32 %v471_v27, %v465_v26  ;;  %3234 = vmatprep.subr.mxu0 %v4284_v28  ;;  %v468_v37 = vmul.f32 %v4284_v28, %v4297_v36  ;;  %v3233_v26 = vpop.f32.mrf.mxu1 }
 0x107   :  { %v4289_v32 = vpop.eup %3607  ;;  %3235 = vmatpush3.msra.mxu0 %v4284_v28 }
 0x108   :  { %v467_v34 = vmul.f32 %v4289_v32, %v4291_v33  ;;  %v473_v35 = vadd.f32 %v472_v31, %v466_v30  ;;  %3236 = vmatprep.subr.mxu0 %v4289_v32  ;;  %v580_v30 = vadd.f32 %v3230_v50, %v4228_v13 }
 0x109   :  { %3237 = vmatpush3.msra.mxu0 %v4289_v32 }
 0x10a   :  { %v474_v38 = vadd.f32 %v473_v35, %v467_v34  ;;  %3238 = vmatprep.subr.mxu0 %v4274_v12  ;;  %v575_v35 = vadd.f32 %v574_v57, %v4232_v18 }
 0x10b   :  { %3239 = vmatpush3.msra.mxu0 %v4274_v12 }
 0x10c   :  { %v475_v39 = vadd.f32 %v474_v38, %v468_v37  ;;  %3240 = vmatprep.subr.mxu0 %v4278_v22  ;;  %v584_v38 = vpop.f32.mrf.mxu1 }
 0x10d   :  { %3241 = vmatpush3.msra.mxu0 %v4278_v22 }
 0x10e   :  { %v476_v40 = vrot.slane %v475_v39, 4  ;;  %3242 = vmatprep.subr.mxu0 %v4264_v63 }
 0x10f   :  { %3243 = vmatpush3.msra.mxu0 %v4264_v63 }
 0x110   :  { %v477_v41 = vadd.f32 %v476_v40, %v475_v39  ;;  %3244 = vmatprep.subr.mxu0 %v4268_v2  ;;  %v590_v40 = vadd.f32 %v3233_v26, %v4226_v8 }
 0x111   :  { %3245 = vmatpush3.msra.mxu0 %v4268_v2 }
 0x112   :  { %v478_v42 = vrot.slane %v477_v41, 2  ;;  %3246 = vmatprep.subr.mxu0 %v4254_v58 }
 0x113   :  { %3247 = vmatpush3.msra.mxu0 %v4254_v58 }
 0x114   :  { %v479_v43 = vadd.f32 %v478_v42, %v477_v41  ;;  %3248 = vmatprep.subr.mxu0 %v4256_v59 }
 0x115   :  { %3249 = vmatpush3.msra.mxu0 %v4256_v59 }
 0x116   :  { %v480_v44 = vrot.slane %v479_v43, 1  ;;  %3251 = vmatmul.mubr.msk.f32.vlgmr.msra.gmra.mxu0 %vm307_vm0, %v3870_v4 }
 0x117   :  { %3253 = vmatprep.mubr.msk.f32.mxu0 %vm307_vm0, %v3877_v6 }
 0x118   :  { %v481_v45 = vadd.f32 %v480_v44, %v479_v43  ;;  %v585_v43 = vadd.f32 %v584_v38, %v4230_v16 }
 0x11a   :  { %482 = vst [vmem:[#allocation3] sm:$0x1] %v481_v45  ;;  %3254 = vmatmul.mubr.msk.f32.gmra.mxu0 %vm307_vm0, %v3891_v9 }
 0x11b   :  { %3256 = vmatprep.mubr.msk.f32.mxu0 %vm307_vm0, %v3898_v11 }
 0x11e   :  { %3257 = vmatmul.mubr.msk.f32.gmra.mxu0 %vm307_vm0, %v3915_v15 }
 0x11f   :  { %3259 = vmatprep.mubr.msk.f32.mxu0 %vm307_vm0, %v3922_v17 }
 0x122   :  { %3260 = vmatmul.mubr.msk.f32.gmra.mxu0 %vm307_vm0, %v3943_v21 }
 0x123   :  { %3298 = vmatprep.mubr.msk.f32.mxu0 %vm307_vm0, %v3868_v3 }
 0x1d6   :  { %v3252_v53 = vpop.f32.mrf.mxu0 }
 0x1d7   :  { %v699_v56 = vadd.f32 %v3252_v53, %v560_v52 }
 0x1d8   :  { %v659_v61 = vpop.f32.mrf.mxu0 }
 0x1d9   :  { %v698_v5 = vadd.f32 %v659_v61, %v555_v54  ;;  %3609 = vtanh.f32 %v699_v56 }
 0x1da   :  { %v3255_v7 = vpop.f32.mrf.mxu0 }
 0x1db   :  { %3611 = vtanh.f32 %v698_v5  ;;  %v701_v20 = vadd.f32 %v3255_v7, %v570_v1 }
 0x1dc   :  { %v669_v27 = vpop.f32.mrf.mxu0 }
 0x1dd   :  { %v700_v31 = vadd.f32 %v669_v27, %v565_v14  ;;  %3613 = vtanh.f32 %v701_v20 }
 0x1de   :  { %v3258_v34 = vpop.f32.mrf.mxu0 }
 0x1df   :  { %3615 = vtanh.f32 %v700_v31  ;;  %v703_v37 = vadd.f32 %v3258_v34, %v580_v30 }
 0x1e0   :  { %v679_v39 = vpop.f32.mrf.mxu0 }
 0x1e1   :  { %v702_v41 = vadd.f32 %v679_v39, %v575_v35  ;;  %3617 = vtanh.f32 %v703_v37 }
 0x1e2   :  { %v3261_v42 = vpop.f32.mrf.mxu0 }
 0x1e3   :  { %3619 = vtanh.f32 %v702_v41  ;;  %v705_v44 = vadd.f32 %v3261_v42, %v590_v40 }
 0x1e4   :  { %v689_v45 = vpop.f32.mrf.mxu0 }
 0x1e5   :  { %3621 = vtanh.f32 %v705_v44  ;;  %v704_v46 = vadd.f32 %v689_v45, %v585_v43 }
 0x1e6   :  { %v4338_v47 = vpop.eup %3609 }
 0x1e7   :  { %5019 = vst [vmem:[#allocation17_spill] sm:$0xff] %v4338_v47  ;;  %3623 = vtanh.f32 %v704_v46  ;;  %v724_v52 = vmul.f32 %v4338_v47, %v4252_v55 }
 0x1e8   :  { %v4340_v48 = vpop.eup %3611 }
 0x1e9   :  { %5020 = vst [vmem:[#allocation18_spill] sm:$0xff] %v4340_v48  ;;  %v723_v49 = vmul.f32 %v4340_v48, %v4249_v51 }
 0x1ea   :  { %v4344_v50 = vpop.eup %3613 }
 0x1eb   :  { %5021 = vst [vmem:[#allocation19_spill] sm:$0xff] %v4344_v50  ;;  %v731_v54 = vadd.f32 %v724_v52, %v723_v49  ;;  %v726_v61 = vmul.f32 %v4344_v50, %v4262_v62 }
 0x1ec   :  { %v4348_v53 = vpop.eup %3615 }
 0x1ed   :  { %5022 = vst [vmem:[#allocation20_spill] sm:$0xff] %v4348_v53  ;;  %v725_v56 = vmul.f32 %v4348_v53, %v4258_v60 }
 0x1ee   :  { %v4352_v57 = vpop.eup %3617 }
 0x1ef   :  { %v732_v1 = vadd.f32 %v731_v54, %v725_v56  ;;  %v728_v26 = vmul.f32 %v4352_v57, %v4280_v24 }
 0x1f0   :  { %v4356_v5 = vpop.eup %3619 }
 0x1f1   :  { %v727_v7 = vmul.f32 %v4356_v5, %v4272_v10  ;;  %v733_v14 = vadd.f32 %v732_v1, %v726_v61 }
 0x1f2   :  { %v4360_v20 = vpop.eup %3621 }
 0x1f3   :  { %v734_v27 = vadd.f32 %v733_v14, %v727_v7  ;;  %3282 = vmatprep.subr.mxu0 %v4360_v20  ;;  %v730_v35 = vmul.f32 %v4360_v20, %v4297_v36 }
 0x1f4   :  { %v4365_v30 = vpop.eup %3623  ;;  %3283 = vmatpush3.msra.mxu0 %v4360_v20 }
 0x1f5   :  { %v729_v31 = vmul.f32 %v4365_v30, %v4291_v33  ;;  %v735_v34 = vadd.f32 %v734_v27, %v728_v26  ;;  %3284 = vmatprep.subr.mxu0 %v4365_v30 }
 0x1f6   :  { %3285 = vmatpush3.msra.mxu0 %v4365_v30 }
 0x1f7   :  { %v736_v37 = vadd.f32 %v735_v34, %v729_v31  ;;  %3286 = vmatprep.subr.mxu0 %v4352_v57 }
 0x1f8   :  { %3287 = vmatpush3.msra.mxu0 %v4352_v57 }
 0x1f9   :  { %v737_v38 = vadd.f32 %v736_v37, %v730_v35  ;;  %3288 = vmatprep.subr.mxu0 %v4356_v5 }
 0x1fa   :  { %3289 = vmatpush3.msra.mxu0 %v4356_v5 }
 0x1fb   :  { %v738_v39 = vrot.slane %v737_v38, 4  ;;  %3290 = vmatprep.subr.mxu0 %v4344_v50 }
 0x1fc   :  { %3291 = vmatpush3.msra.mxu0 %v4344_v50 }
 0x1fd   :  { %v739_v40 = vadd.f32 %v738_v39, %v737_v38  ;;  %3292 = vmatprep.subr.mxu0 %v4348_v53 }
 0x1fe   :  { %3293 = vmatpush3.msra.mxu0 %v4348_v53 }
 0x1ff   :  { %v740_v41 = vrot.slane %v739_v40, 2  ;;  %3294 = vmatprep.subr.mxu0 %v4338_v47 }
 0x200   :  { %3295 = vmatpush3.msra.mxu0 %v4338_v47 }
 0x201   :  { %v741_v42 = vadd.f32 %v740_v41, %v739_v40  ;;  %3296 = vmatprep.subr.mxu0 %v4340_v48 }
 0x202   :  { %3297 = vmatpush3.msra.mxu0 %v4340_v48 }
 0x203   :  { %v742_v43 = vrot.slane %v741_v42, 1  ;;  %3299 = vmatmul.mubr.msk.f32.vlgmr.msra.gmra.mxu0 %vm307_vm0, %v3870_v4  ;;  %v3272_v4 = vpop.f32.mrf.mxu1 }
 0x204   :  { %3301 = vmatprep.mubr.msk.f32.mxu0 %vm307_vm0, %v3877_v6  ;;  %v822_v54 = vadd.f32 %v3272_v4, %v4238_v25 }
 0x205   :  { %v743_v44 = vadd.f32 %v742_v43, %v741_v42  ;;  %v816_v45 = vpop.f32.mrf.mxu1 }
 0x206   :  { %v817_v61 = vadd.f32 %v816_v45, %v4241_v29 }
 0x207   :  { %744 = vst [vmem:[#allocation3 + $0x1] sm:$0x1] %v743_v44  ;;  %3302 = vmatmul.mubr.msk.f32.gmra.mxu0 %vm307_vm0, %v3891_v9  ;;  %v3275_v46 = vpop.f32.mrf.mxu1 }
 0x208   :  { %3304 = vmatprep.mubr.msk.f32.mxu0 %vm307_vm0, %v3898_v11  ;;  %v832_v26 = vadd.f32 %v3275_v46, %v4234_v19 }
 0x209   :  { %v826_v49 = vpop.f32.mrf.mxu1 }
 0x20b   :  { %3305 = vmatmul.mubr.msk.f32.gmra.mxu0 %vm307_vm0, %v3915_v15  ;;  %v3278_v52 = vpop.f32.mrf.mxu1 }
 0x20c   :  { %3307 = vmatprep.mubr.msk.f32.mxu0 %vm307_vm0, %v3922_v17  ;;  %v842_v38 = vadd.f32 %v3278_v52, %v4228_v13 }
 0x20d   :  { %v836_v7 = vpop.f32.mrf.mxu1 }
 0x20e   :  { %v837_v41 = vadd.f32 %v836_v7, %v4232_v18 }
 0x20f   :  { %3308 = vmatmul.mubr.msk.f32.gmra.mxu0 %vm307_vm0, %v3943_v21  ;;  %v3281_v35 = vpop.f32.mrf.mxu1 }
 0x210   :  { %3346 = vmatprep.mubr.msk.f32.mxu0 %vm307_vm0, %v3868_v3  ;;  %v827_v3 = vadd.f32 %v826_v49, %v4236_v23  ;;  %v852_v4 = vadd.f32 %v3281_v35, %v4226_v8 }
 0x211   :  { %v846_v43 = vpop.f32.mrf.mxu1 }
 0x212   :  { %v847_v49 = vadd.f32 %v846_v43, %v4230_v16 }
 0x2c3   :  { %v3300_v56 = vpop.f32.mrf.mxu0 }
 0x2c4   :  { %v961_v1 = vadd.f32 %v3300_v56, %v822_v54 }
 0x2c5   :  { %v921_v14 = vpop.f32.mrf.mxu0 }
 0x2c6   :  { %v960_v27 = vadd.f32 %v921_v14, %v817_v61  ;;  %3625 = vtanh.f32 %v961_v1 }
 0x2c7   :  { %v3303_v31 = vpop.f32.mrf.mxu0 }
 0x2c8   :  { %3627 = vtanh.f32 %v960_v27  ;;  %v963_v34 = vadd.f32 %v3303_v31, %v832_v26 }
 0x2c9   :  { %v931_v37 = vpop.f32.mrf.mxu0 }
 0x2ca   :  { %v962_v39 = vadd.f32 %v931_v37, %v827_v3  ;;  %3629 = vtanh.f32 %v963_v34 }
 0x2cb   :  { %v3306_v40 = vpop.f32.mrf.mxu0 }
 0x2cc   :  { %3631 = vtanh.f32 %v962_v39  ;;  %v965_v42 = vadd.f32 %v3306_v40, %v842_v38 }
 0x2cd   :  { %v941_v44 = vpop.f32.mrf.mxu0 }
 0x2ce   :  { %v964_v45 = vadd.f32 %v941_v44, %v837_v41  ;;  %3633 = vtanh.f32 %v965_v42 }
 0x2cf   :  { %v3309_v46 = vpop.f32.mrf.mxu0 }
 0x2d0   :  { %3635 = vtanh.f32 %v964_v45  ;;  %v967_v54 = vadd.f32 %v3309_v46, %v852_v4 }
 0x2d1   :  { %v951_v56 = vpop.f32.mrf.mxu0 }
 0x2d2   :  { %3637 = vtanh.f32 %v967_v54  ;;  %v966_v52 = vadd.f32 %v951_v56, %v847_v49 }
 0x2d3   :  { %v4410_v61 = vpop.eup %3625 }
 0x2d4   :  { %5023 = vst [vmem:[#allocation21_spill] sm:$0xff] %v4410_v61  ;;  %3639 = vtanh.f32 %v966_v52  ;;  %v986_v26 = vmul.f32 %v4410_v61, %v4252_v55 }
 0x2d5   :  { %v4412_v1 = vpop.eup %3627 }
 0x2d6   :  { %5024 = vst [vmem:[#allocation22_spill] sm:$0xff] %v4412_v1  ;;  %v985_v7 = vmul.f32 %v4412_v1, %v4249_v51 }
 0x2d7   :  { %v4416_v14 = vpop.eup %3629 }
 0x2d8   :  { %5025 = vst [vmem:[#allocation23_spill] sm:$0xff] %v4416_v14  ;;  %v993_v31 = vadd.f32 %v986_v26, %v985_v7  ;;  %v988_v35 = vmul.f32 %v4416_v14, %v4262_v62 }
 0x2d9   :  { %v4420_v27 = vpop.eup %3631 }
 0x2da   :  { %5026 = vst [vmem:[#allocation24_spill] sm:$0xff] %v4420_v27  ;;  %v987_v3 = vmul.f32 %v4420_v27, %v4258_v60 }
 0x2db   :  { %v4424_v34 = vpop.eup %3633 }
 0x2dc   :  { %v994_v37 = vadd.f32 %v993_v31, %v987_v3  ;;  %v990_v42 = vmul.f32 %v4424_v34, %v4280_v24  ;;  %v4458_v3 = vld [vmem:[#allocation4 + $0x8] sm:$0xff] }
 0x2dd   :  { %v4428_v38 = vpop.eup %3635 }
 0x2de   :  { %v989_v39 = vmul.f32 %v4428_v38, %v4272_v10  ;;  %v995_v40 = vadd.f32 %v994_v37, %v988_v35  ;;  %v4474_v37 = vld [vmem:[#allocation4] sm:$0xff] }
 0x2df   :  { %v4432_v41 = vpop.eup %3637 }
 0x2e0   :  { %v996_v43 = vadd.f32 %v995_v40, %v989_v39  ;;  %3330 = vmatprep.subr.mxu0 %v4432_v41  ;;  %v992_v46 = vmul.f32 %v4432_v41, %v4297_v36 }
 0x2e1   :  { %v4437_v44 = vpop.eup %3639  ;;  %3331 = vmatpush3.msra.mxu0 %v4432_v41 }
 0x2e2   :  { %v991_v4 = vmul.f32 %v4437_v44, %v4291_v33  ;;  %v997_v45 = vadd.f32 %v996_v43, %v990_v42  ;;  %3332 = vmatprep.subr.mxu0 %v4437_v44 }
 0x2e3   :  { %3333 = vmatpush3.msra.mxu0 %v4437_v44 }
 0x2e4   :  { %v998_v49 = vadd.f32 %v997_v45, %v991_v4  ;;  %3334 = vmatprep.subr.mxu0 %v4424_v34 }
 0x2e5   :  { %3335 = vmatpush3.msra.mxu0 %v4424_v34 }
 0x2e6   :  { %v999_v54 = vadd.f32 %v998_v49, %v992_v46  ;;  %3336 = vmatprep.subr.mxu0 %v4428_v38 }
 0x2e7   :  { %3337 = vmatpush3.msra.mxu0 %v4428_v38 }
 0x2e8   :  { %v1000_v56 = vrot.slane %v999_v54, 4  ;;  %3338 = vmatprep.subr.mxu0 %v4416_v14 }
 0x2e9   :  { %3339 = vmatpush3.msra.mxu0 %v4416_v14 }
 0x2ea   :  { %v1001_v52 = vadd.f32 %v1000_v56, %v999_v54  ;;  %3340 = vmatprep.subr.mxu0 %v4420_v27 }
 0x2eb   :  { %3341 = vmatpush3.msra.mxu0 %v4420_v27 }
 0x2ec   :  { %v1002_v7 = vrot.slane %v1001_v52, 2  ;;  %3342 = vmatprep.subr.mxu0 %v4410_v61 }
 0x2ed   :  { %3343 = vmatpush3.msra.mxu0 %v4410_v61 }
 0x2ee   :  { %v1003_v26 = vadd.f32 %v1002_v7, %v1001_v52  ;;  %3344 = vmatprep.subr.mxu0 %v4412_v1 }
 0x2ef   :  { %3345 = vmatpush3.msra.mxu0 %v4412_v1 }
 0x2f0   :  { %v1004_v31 = vrot.slane %v1003_v26, 1  ;;  %3347 = vmatmul.mubr.msk.f32.vlgmr.msra.gmra.mxu0 %vm307_vm0, %v4458_v3 }
 0x2f1   :  { %3349 = vmatprep.mubr.msk.f32.mxu0 %vm307_vm0, %v3877_v6  ;;  %v3320_v6 = vpop.f32.mrf.mxu1 }
 0x2f2   :  { %v1005_v35 = vadd.f32 %v1004_v31, %v1003_v26 }
 0x2f3   :  { %v1078_v39 = vpop.f32.mrf.mxu1 }
 0x2f4   :  { %1006 = vst [vmem:[#allocation3 + $0x2] sm:$0x1] %v1005_v35  ;;  %3350 = vmatmul.mubr.msk.f32.gmra.mxu0 %vm307_vm0, %v3891_v9 }
 0x2f5   :  { %3352 = vmatprep.mubr.msk.f32.mxu0 %vm307_vm0, %v3898_v11  ;;  %v3323_v9 = vpop.f32.mrf.mxu1  ;;  %v1084_v11 = vadd.f32 %v3320_v6, %v4238_v25 }
 0x2f7   :  { %v1088_v40 = vpop.f32.mrf.mxu1 }
 0x2f8   :  { %3353 = vmatmul.mubr.msk.f32.gmra.mxu0 %vm307_vm0, %v3915_v15  ;;  %v1079_v15 = vadd.f32 %v1078_v39, %v4241_v29  ;;  %v1089_v54 = vadd.f32 %v1088_v40, %v4236_v23 }
 0x2f9   :  { %3355 = vmatprep.mubr.msk.f32.mxu0 %vm307_vm0, %v3922_v17  ;;  %v3326_v42 = vpop.f32.mrf.mxu1 }
 0x2fa   :  { %v1104_v26 = vadd.f32 %v3326_v42, %v4228_v13 }
 0x2fb   :  { %v1098_v17 = vpop.f32.mrf.mxu1 }
 0x2fc   :  { %3356 = vmatmul.mubr.msk.f32.gmra.mxu0 %vm307_vm0, %v3943_v21  ;;  %v1094_v21 = vadd.f32 %v3323_v9, %v4234_v19  ;;  %v1099_v6 = vadd.f32 %v1098_v17, %v4232_v18 }
 0x2fd   :  { %3394 = vmatprep.mubr.msk.f32.mxu0 %vm307_vm0, %v4474_v37  ;;  %v3329_v52 = vpop.f32.mrf.mxu1 }
 0x3b0   :  { %v3348_v43 = vpop.f32.mrf.mxu0 }
 0x3b1   :  { %v1223_v4 = vadd.f32 %v3348_v43, %v1084_v11  ;;  %v1108_v11 = vpop.f32.mrf.mxu1  ;;  %v1114_v43 = vadd.f32 %v3329_v52, %v4226_v8 }
 0x3b2   :  { %v1183_v45 = vpop.f32.mrf.mxu0 }
 0x3b3   :  { %v1222_v46 = vadd.f32 %v1183_v45, %v1079_v15  ;;  %3641 = vtanh.f32 %v1223_v4  ;;  %v1109_v4 = vadd.f32 %v1108_v11, %v4230_v16 }
 0x3b4   :  { %v3351_v49 = vpop.f32.mrf.mxu0 }
 0x3b5   :  { %3643 = vtanh.f32 %v1222_v46  ;;  %v1225_v56 = vadd.f32 %v3351_v49, %v1094_v21 }
 0x3b6   :  { %v1193_v7 = vpop.f32.mrf.mxu0 }
 0x3b7   :  { %v1224_v31 = vadd.f32 %v1193_v7, %v1089_v54  ;;  %3645 = vtanh.f32 %v1225_v56 }
 0x3b8   :  { %v3354_v35 = vpop.f32.mrf.mxu0 }
 0x3b9   :  { %3647 = vtanh.f32 %v1224_v31  ;;  %v1227_v39 = vadd.f32 %v3354_v35, %v1104_v26 }
 0x3ba   :  { %v1203_v9 = vpop.f32.mrf.mxu0 }
 0x3bb   :  { %v1226_v15 = vadd.f32 %v1203_v9, %v1099_v6  ;;  %3649 = vtanh.f32 %v1227_v39 }
 0x3bc   :  { %v3357_v40 = vpop.f32.mrf.mxu0 }
 0x3bd   :  { %3651 = vtanh.f32 %v1226_v15  ;;  %v1229_v45 = vadd.f32 %v3357_v40, %v1114_v43 }
 0x3be   :  { %v1213_v21 = vpop.f32.mrf.mxu0 }
 0x3bf   :  { %3653 = vtanh.f32 %v1229_v45  ;;  %v1228_v42 = vadd.f32 %v1213_v21, %v1109_v4 }
 0x3c0   :  { %v4486_v46 = vpop.eup %3641 }
 0x3c1   :  { %5027 = vst [vmem:[#allocation25_spill] sm:$0xff] %v4486_v46  ;;  %3655 = vtanh.f32 %v1228_v42  ;;  %v1248_v56 = vmul.f32 %v4486_v46, %v4252_v55 }
 0x3c2   :  { %v4488_v17 = vpop.eup %3643 }
 0x3c3   :  { %5028 = vst [vmem:[#allocation26_spill] sm:$0xff] %v4488_v17  ;;  %v1247_v49 = vmul.f32 %v4488_v17, %v4249_v51 }
 0x3c4   :  { %v4492_v54 = vpop.eup %3645 }
 0x3c5   :  { %5029 = vst [vmem:[#allocation27_spill] sm:$0xff] %v4492_v54  ;;  %v1255_v7 = vadd.f32 %v1248_v56, %v1247_v49  ;;  %v1250_v35 = vmul.f32 %v4492_v54, %v4262_v62 }
 0x3c6   :  { %v4496_v52 = vpop.eup %3647 }
 0x3c7   :  { %5030 = vst [vmem:[#allocation28_spill] sm:$0xff] %v4496_v52  ;;  %v1249_v26 = vmul.f32 %v4496_v52, %v4258_v60 }
 0x3c8   :  { %v4500_v31 = vpop.eup %3649 }
 0x3c9   :  { %v1256_v6 = vadd.f32 %v1255_v7, %v1249_v26  ;;  %v1252_v15 = vmul.f32 %v4500_v31, %v4280_v24 }
 0x3ca   :  { %v4504_v39 = vpop.eup %3651 }
 0x3cb   :  { %5031 = vst [vmem:[#allocation29_spill] sm:$0xff] %v4504_v39  ;;  %v1251_v11 = vmul.f32 %v4504_v39, %v4272_v10  ;;  %v1257_v9 = vadd.f32 %v1256_v6, %v1250_v35 }
 0x3cc   :  { %v4508_v43 = vpop.eup %3653 }
 0x3cd   :  { %v1258_v40 = vadd.f32 %v1257_v9, %v1251_v11  ;;  %3378 = vmatprep.subr.mxu0 %v4508_v43  ;;  %v1254_v42 = vmul.f32 %v4508_v43, %v4297_v36  ;;  %v4536_v9 = vld [vmem:[#allocation4 + $0x10] sm:$0xff] }
 0x3ce   :  { %v4513_v4 = vpop.eup %3655  ;;  %3379 = vmatpush3.msra.mxu0 %v4508_v43 }
 0x3cf   :  { %v1253_v45 = vmul.f32 %v4513_v4, %v4291_v33  ;;  %v1259_v21 = vadd.f32 %v1258_v40, %v1252_v15  ;;  %3380 = vmatprep.subr.mxu0 %v4513_v4  ;;  %v4540_v40 = vld [vmem:[#allocation4 + $0x18] sm:$0xff] }
 0x3d0   :  { %3381 = vmatpush3.msra.mxu0 %v4513_v4 }
 0x3d1   :  { %v1260_v49 = vadd.f32 %v1259_v21, %v1253_v45  ;;  %3382 = vmatprep.subr.mxu0 %v4500_v31  ;;  %v4544_v45 = vld [vmem:[#allocation4 + $0x20] sm:$0xff]  ;;  %v4548_v21 = vld [vmem:[#allocation4 + $0x28] sm:$0xff] }
 0x3d2   :  { %3383 = vmatpush3.msra.mxu0 %v4500_v31 }
 0x3d3   :  { %v1261_v56 = vadd.f32 %v1260_v49, %v1254_v42  ;;  %3384 = vmatprep.subr.mxu0 %v4504_v39  ;;  %v4552_v42 = vld [vmem:[#allocation4 + $0x30] sm:$0xff]  ;;  %v4556_v49 = vld [vmem:[#allocation4 + $0x38] sm:$0xff] }
 0x3d4   :  { %3385 = vmatpush3.msra.mxu0 %v4504_v39 }
 0x3d5   :  { %v1262_v7 = vrot.slane %v1261_v56, 4  ;;  %3386 = vmatprep.subr.mxu0 %v4492_v54 }
 0x3d6   :  { %3387 = vmatpush3.msra.mxu0 %v4492_v54 }
 0x3d7   :  { %v1263_v26 = vadd.f32 %v1262_v7, %v1261_v56  ;;  %3388 = vmatprep.subr.mxu0 %v4496_v52  ;;  %v3368_v56 = vpop.f32.mrf.mxu1 }
 0x3d8   :  { %3389 = vmatpush3.msra.mxu0 %v4496_v52 }
 0x3d9   :  { %v1264_v35 = vrot.slane %v1263_v26, 2  ;;  %3390 = vmatprep.subr.mxu0 %v4486_v46  ;;  %v1340_v7 = vpop.f32.mrf.mxu1 }
 0x3da   :  { %3391 = vmatpush3.msra.mxu0 %v4486_v46  ;;  %v1341_v0 = vadd.f32 %v1340_v7, %v4241_v29 }
 0x3db   :  { %v1265_v6 = vadd.f32 %v1264_v35, %v1263_v26  ;;  %3392 = vmatprep.subr.mxu0 %v4488_v17  ;;  %v3371_v26 = vpop.f32.mrf.mxu1 }
 0x3dc   :  { %3393 = vmatpush3.msra.mxu0 %v4488_v17  ;;  %v1356_v48 = vadd.f32 %v3371_v26, %v4234_v19 }
 0x3dd   :  { %v1266_v11 = vrot.slane %v1265_v6, 1  ;;  %3395 = vmatmul.mubr.msk.f32.vlgmr.msra.gmra.mxu0 %vm307_vm0, %v4458_v3  ;;  %v1350_v35 = vpop.f32.mrf.mxu1 }
 0x3de   :  { %3397 = vmatprep.mubr.msk.f32.mxu0 %vm307_vm0, %v4536_v9  ;;  %v1351_v47 = vadd.f32 %v1350_v35, %v4236_v23 }
 0x3df   :  { %v1267_v15 = vadd.f32 %v1266_v11, %v1265_v6  ;;  %v3374_v6 = vpop.f32.mrf.mxu1  ;;  %v1346_v11 = vadd.f32 %v3368_v56, %v4238_v25 }
 0x3e0   :  { %v1366_v53 = vadd.f32 %v3374_v6, %v4228_v13 }
 0x3e1   :  { %1268 = vst [vmem:[#allocation3 + $0x3] sm:$0x1] %v1267_v15  ;;  %3398 = vmatmul.mubr.msk.f32.gmra.mxu0 %vm307_vm0, %v4540_v40  ;;  %v1360_v1 = vpop.f32.mrf.mxu1 }
 0x3e2   :  { %3400 = vmatprep.mubr.msk.f32.mxu0 %vm307_vm0, %v4544_v45  ;;  %v1361_v7 = vadd.f32 %v1360_v1, %v4232_v18 }
 0x3e3   :  { %v3377_v52 = vpop.f32.mrf.mxu1 }
 0x3e5   :  { %3401 = vmatmul.mubr.msk.f32.gmra.mxu0 %vm307_vm0, %v4548_v21 }
 0x3e6   :  { %3403 = vmatprep.mubr.msk.f32.mxu0 %vm307_vm0, %v4552_v42 }
 0x3e9   :  { %3404 = vmatmul.mubr.msk.f32.gmra.mxu0 %vm307_vm0, %v4556_v49 }
 0x3ea   :  { %3442 = vmatprep.mubr.msk.f32.mxu0 %vm307_vm0, %v4474_v37 }
 0x49d   :  { %v3396_v15 = vpop.f32.mrf.mxu0 }
 0x49e   :  { %v1485_v17 = vadd.f32 %v3396_v15, %v1346_v11  ;;  %v1370_v15 = vpop.f32.mrf.mxu1 }
 0x49f   :  { %v1445_v46 = vpop.f32.mrf.mxu0 }
 0x4a0   :  { %v1484_v59 = vadd.f32 %v1445_v46, %v1341_v0  ;;  %3657 = vtanh.f32 %v1485_v17  ;;  %v1376_v0 = vadd.f32 %v3377_v52, %v4226_v8 }
 0x4a1   :  { %v3399_v61 = vpop.f32.mrf.mxu0 }
 0x4a2   :  { %3659 = vtanh.f32 %v1484_v59  ;;  %v1487_v58 = vadd.f32 %v3399_v61, %v1356_v48  ;;  %v1371_v59 = vadd.f32 %v1370_v15, %v4230_v16 }
 0x4a3   :  { %v1455_v27 = vpop.f32.mrf.mxu0 }
 0x4a4   :  { %v1486_v56 = vadd.f32 %v1455_v27, %v1351_v47  ;;  %3661 = vtanh.f32 %v1487_v58 }
 0x4a5   :  { %v3402_v2 = vpop.f32.mrf.mxu0 }
 0x4a6   :  { %3663 = vtanh.f32 %v1486_v56  ;;  %v1489_v11 = vadd.f32 %v3402_v2, %v1366_v53 }
 0x4a7   :  { %v1465_v26 = vpop.f32.mrf.mxu0 }
 0x4a8   :  { %v1488_v46 = vadd.f32 %v1465_v26, %v1361_v7  ;;  %3665 = vtanh.f32 %v1489_v11 }
 0x4a9   :  { %v3405_v17 = vpop.f32.mrf.mxu0 }
 0x4aa   :  { %3667 = vtanh.f32 %v1488_v46  ;;  %v1491_v48 = vadd.f32 %v3405_v17, %v1376_v0 }
 0x4ab   :  { %v1475_v61 = vpop.f32.mrf.mxu0 }
 0x4ac   :  { %3669 = vtanh.f32 %v1491_v48  ;;  %v1490_v47 = vadd.f32 %v1475_v61, %v1371_v59 }
 0x4ad   :  { %v4570_v58 = vpop.eup %3657 }
 0x4ae   :  { %5032 = vst [vmem:[#allocation30_spill] sm:$0xff] %v4570_v58  ;;  %3671 = vtanh.f32 %v1490_v47  ;;  %v1510_v27 = vmul.f32 %v4570_v58, %v4252_v55 }
 0x4af   :  { %v4572_v1 = vpop.eup %3659 }
 0x4b0   :  { %5033 = vst [vmem:[#allocation31_spill] sm:$0xff] %v4572_v1  ;;  %v1509_v2 = vmul.f32 %v4572_v1, %v4249_v51 }
 0x4b1   :  { %v4576_v53 = vpop.eup %3661 }
 0x4b2   :  { %5034 = vst [vmem:[#allocation32_spill] sm:$0xff] %v4576_v53  ;;  %v1517_v35 = vadd.f32 %v1510_v27, %v1509_v2  ;;  %v1512_v7 = vmul.f32 %v4576_v53, %v4262_v62 }
 0x4b3   :  { %v4580_v52 = vpop.eup %3663 }
 0x4b4   :  { %5035 = vst [vmem:[#allocation33_spill] sm:$0xff] %v4580_v52  ;;  %v1511_v6 = vmul.f32 %v4580_v52, %v4258_v60 }
 0x4b5   :  { %v4584_v56 = vpop.eup %3665 }
 0x4b6   :  { %v1518_v11 = vadd.f32 %v1517_v35, %v1511_v6  ;;  %v1514_v17 = vmul.f32 %v4584_v56, %v4280_v24 }
 0x4b7   :  { %v4588_v15 = vpop.eup %3667 }
 0x4b8   :  { %5036 = vst [vmem:[#allocation34_spill] sm:$0xff] %v4588_v15  ;;  %v1513_v26 = vmul.f32 %v4588_v15, %v4272_v10  ;;  %v1519_v0 = vadd.f32 %v1518_v11, %v1512_v7 }
 0x4b9   :  { %v4592_v46 = vpop.eup %3669 }
 0x4ba   :  { %v1520_v59 = vadd.f32 %v1519_v0, %v1513_v26  ;;  %3426 = vmatprep.subr.mxu0 %v4592_v46  ;;  %v1516_v2 = vmul.f32 %v4592_v46, %v4297_v36 }
 0x4bb   :  { %v4597_v48 = vpop.eup %3671  ;;  %3427 = vmatpush3.msra.mxu0 %v4592_v46 }
 0x4bc   :  { %v1515_v61 = vmul.f32 %v4597_v48, %v4291_v33  ;;  %v1521_v47 = vadd.f32 %v1520_v59, %v1514_v17  ;;  %3428 = vmatprep.subr.mxu0 %v4597_v48  ;;  %v3416_v59 = vpop.f32.mrf.mxu1 }
 0x4bd   :  { %3429 = vmatpush3.msra.mxu0 %v4597_v48 }
 0x4be   :  { %v1522_v27 = vadd.f32 %v1521_v47, %v1515_v61  ;;  %3430 = vmatprep.subr.mxu0 %v4584_v56  ;;  %v1602_v61 = vpop.f32.mrf.mxu1 }
 0x4bf   :  { %3431 = vmatpush3.msra.mxu0 %v4584_v56 }
 0x4c0   :  { %v1523_v35 = vadd.f32 %v1522_v27, %v1516_v2  ;;  %3432 = vmatprep.subr.mxu0 %v4588_v15  ;;  %v3419_v47 = vpop.f32.mrf.mxu1 }
 0x4c1   :  { %3433 = vmatpush3.msra.mxu0 %v4588_v15 }
 0x4c2   :  { %v1524_v6 = vrot.slane %v1523_v35, 4  ;;  %3434 = vmatprep.subr.mxu0 %v4576_v53  ;;  %v1612_v2 = vpop.f32.mrf.mxu1 }
 0x4c3   :  { %3435 = vmatpush3.msra.mxu0 %v4576_v53 }
 0x4c4   :  { %v1525_v7 = vadd.f32 %v1524_v6, %v1523_v35  ;;  %3436 = vmatprep.subr.mxu0 %v4580_v52  ;;  %v3422_v27 = vpop.f32.mrf.mxu1  ;;  %v1608_v35 = vadd.f32 %v3416_v59, %v4238_v25 }
 0x4c5   :  { %3437 = vmatpush3.msra.mxu0 %v4580_v52  ;;  %v1613_v52 = vadd.f32 %v1612_v2, %v4236_v23  ;;  %v1628_v15 = vadd.f32 %v3422_v27, %v4228_v13 }
 0x4c6   :  { %v1526_v11 = vrot.slane %v1525_v7, 2  ;;  %3438 = vmatprep.subr.mxu0 %v4570_v58 }
 0x4c7   :  { %3439 = vmatpush3.msra.mxu0 %v4570_v58 }
 0x4c8   :  { %v1527_v26 = vadd.f32 %v1526_v11, %v1525_v7  ;;  %3440 = vmatprep.subr.mxu0 %v4572_v1  ;;  %v1603_v7 = vadd.f32 %v1602_v61, %v4241_v29 }
 0x4c9   :  { %3441 = vmatpush3.msra.mxu0 %v4572_v1 }
 0x4ca   :  { %v1528_v0 = vrot.slane %v1527_v26, 1  ;;  %3443 = vmatmul.mubr.msk.f32.vlgmr.msra.gmra.mxu0 %vm307_vm0, %v4458_v3 }
 0x4cb   :  { %3445 = vmatprep.mubr.msk.f32.mxu0 %vm307_vm0, %v4536_v9 }
 0x4cc   :  { %v1529_v17 = vadd.f32 %v1528_v0, %v1527_v26  ;;  %v1622_v26 = vpop.f32.mrf.mxu1 }
 0x4cd   :  { %v1623_v61 = vadd.f32 %v1622_v26, %v4232_v18 }
 0x4ce   :  { %1530 = vst [vmem:[#allocation3 + $0x4] sm:$0x1] %v1529_v17  ;;  %3446 = vmatmul.mubr.msk.f32.gmra.mxu0 %vm307_vm0, %v4540_v40  ;;  %v1618_v17 = vadd.f32 %v3419_v47, %v4234_v19  ;;  %v3425_v54 = vpop.f32.mrf.mxu1 }
 0x4cf   :  { %3448 = vmatprep.mubr.msk.f32.mxu0 %vm307_vm0, %v4544_v45 }
 0x4d2   :  { %3449 = vmatmul.mubr.msk.f32.gmra.mxu0 %vm307_vm0, %v4548_v21 }
 0x4d3   :  { %3451 = vmatprep.mubr.msk.f32.mxu0 %vm307_vm0, %v4552_v42 }
 0x4d6   :  { %3452 = vmatmul.mubr.msk.f32.gmra.mxu0 %vm307_vm0, %v4556_v49 }
 0x4d7   :  { %3490 = vmatprep.mubr.msk.f32.mxu0 %vm307_vm0, %v4474_v37 }
 0x58a   :  { %v3444_v6 = vpop.f32.mrf.mxu0 }
 0x58b   :  { %v1747_v11 = vadd.f32 %v3444_v6, %v1608_v35  ;;  %v1632_v6 = vpop.f32.mrf.mxu1 }
 0x58c   :  { %v1707_v0 = vpop.f32.mrf.mxu0 }
 0x58d   :  { %v1746_v1 = vadd.f32 %v1707_v0, %v1603_v7  ;;  %3673 = vtanh.f32 %v1747_v11  ;;  %v1638_v7 = vadd.f32 %v3425_v54, %v4226_v8 }
 0x58e   :  { %v3447_v58 = vpop.f32.mrf.mxu0 }
 0x58f   :  { %3675 = vtanh.f32 %v1746_v1  ;;  %v1749_v53 = vadd.f32 %v3447_v58, %v1618_v17  ;;  %v1633_v58 = vadd.f32 %v1632_v6, %v4230_v16 }
 0x590   :  { %v1717_v14 = vpop.f32.mrf.mxu0 }
 0x591   :  { %v1748_v59 = vadd.f32 %v1717_v14, %v1613_v52  ;;  %3677 = vtanh.f32 %v1749_v53 }
 0x592   :  { %v3450_v50 = vpop.f32.mrf.mxu0 }
 0x593   :  { %3679 = vtanh.f32 %v1748_v59  ;;  %v1751_v35 = vadd.f32 %v3450_v50, %v1628_v15 }
 0x594   :  { %v1727_v47 = vpop.f32.mrf.mxu0 }
 0x595   :  { %v1750_v11 = vadd.f32 %v1727_v47, %v1623_v61  ;;  %3681 = vtanh.f32 %v1751_v35 }
 0x596   :  { %v3453_v2 = vpop.f32.mrf.mxu0 }
 0x597   :  { %3683 = vtanh.f32 %v1750_v11  ;;  %v1753_v1 = vadd.f32 %v3453_v2, %v1638_v7 }
 0x598   :  { %v1737_v0 = vpop.f32.mrf.mxu0 }
 0x599   :  { %3685 = vtanh.f32 %v1753_v1  ;;  %v1752_v14 = vadd.f32 %v1737_v0, %v1633_v58 }
 0x59a   :  { %v4642_v53 = vpop.eup %3673 }
 0x59b   :  { %5037 = vst [vmem:[#allocation35_spill] sm:$0xff] %v4642_v53  ;;  %3687 = vtanh.f32 %v1752_v14  ;;  %v1772_v54 = vmul.f32 %v4642_v53, %v4252_v55 }
 0x59c   :  { %v4644_v52 = vpop.eup %3675 }
 0x59d   :  { %5038 = vst [vmem:[#allocation36_spill] sm:$0xff] %v4644_v52  ;;  %v1771_v50 = vmul.f32 %v4644_v52, %v4249_v51 }
 0x59e   :  { %v4648_v15 = vpop.eup %3677 }
 0x59f   :  { %5039 = vst [vmem:[#allocation37_spill] sm:$0xff] %v4648_v15  ;;  %v1779_v26 = vadd.f32 %v1772_v54, %v1771_v50  ;;  %v1774_v61 = vmul.f32 %v4648_v15, %v4262_v62 }
 0x5a0   :  { %v4652_v27 = vpop.eup %3679 }
 0x5a1   :  { %5040 = vst [vmem:[#allocation38_spill] sm:$0xff] %v4652_v27  ;;  %v1773_v17 = vmul.f32 %v4652_v27, %v4258_v60 }
 0x5a2   :  { %v4656_v59 = vpop.eup %3681 }
 0x5a3   :  { %v1780_v35 = vadd.f32 %v1779_v26, %v1773_v17  ;;  %v1776_v2 = vmul.f32 %v4656_v59, %v4280_v24 }
 0x5a4   :  { %v4660_v6 = vpop.eup %3683 }
 0x5a5   :  { %5041 = vst [vmem:[#allocation39_spill] sm:$0xff] %v4660_v6  ;;  %v1775_v47 = vmul.f32 %v4660_v6, %v4272_v10  ;;  %v1781_v7 = vadd.f32 %v1780_v35, %v1774_v61 }
 0x5a6   :  { %v4664_v11 = vpop.eup %3685 }
 0x5a7   :  { %v1782_v58 = vadd.f32 %v1781_v7, %v1775_v47  ;;  %3474 = vmatprep.subr.mxu0 %v4664_v11  ;;  %v1778_v50 = vmul.f32 %v4664_v11, %v4297_v36 }
 0x5a8   :  { %v4669_v1 = vpop.eup %3687  ;;  %3475 = vmatpush3.msra.mxu0 %v4664_v11 }
 0x5a9   :  { %v1777_v0 = vmul.f32 %v4669_v1, %v4291_v33  ;;  %v1783_v14 = vadd.f32 %v1782_v58, %v1776_v2  ;;  %3476 = vmatprep.subr.mxu0 %v4669_v1  ;;  %v3464_v58 = vpop.f32.mrf.mxu1 }
 0x5aa   :  { %3477 = vmatpush3.msra.mxu0 %v4669_v1 }
 0x5ab   :  { %v1784_v54 = vadd.f32 %v1783_v14, %v1777_v0  ;;  %3478 = vmatprep.subr.mxu0 %v4656_v59  ;;  %v1864_v0 = vpop.f32.mrf.mxu1 }
 0x5ac   :  { %3479 = vmatpush3.msra.mxu0 %v4656_v59 }
 0x5ad   :  { %v1785_v26 = vadd.f32 %v1784_v54, %v1778_v50  ;;  %3480 = vmatprep.subr.mxu0 %v4660_v6  ;;  %v3467_v14 = vpop.f32.mrf.mxu1 }
 0x5ae   :  { %3481 = vmatpush3.msra.mxu0 %v4660_v6 }
 0x5af   :  { %v1786_v17 = vrot.slane %v1785_v26, 4  ;;  %3482 = vmatprep.subr.mxu0 %v4648_v15  ;;  %v1874_v50 = vpop.f32.mrf.mxu1 }
 0x5b0   :  { %3483 = vmatpush3.msra.mxu0 %v4648_v15 }
 0x5b1   :  { %v1787_v61 = vadd.f32 %v1786_v17, %v1785_v26  ;;  %3484 = vmatprep.subr.mxu0 %v4652_v27  ;;  %v3470_v54 = vpop.f32.mrf.mxu1  ;;  %v1870_v26 = vadd.f32 %v3464_v58, %v4238_v25 }
 0x5b2   :  { %3485 = vmatpush3.msra.mxu0 %v4652_v27  ;;  %v1890_v63 = vadd.f32 %v3470_v54, %v4228_v13 }
 0x5b3   :  { %v1788_v35 = vrot.slane %v1787_v61, 2  ;;  %3486 = vmatprep.subr.mxu0 %v4642_v53 }
 0x5b4   :  { %3487 = vmatpush3.msra.mxu0 %v4642_v53 }
 0x5b5   :  { %v1789_v47 = vadd.f32 %v1788_v35, %v1787_v61  ;;  %3488 = vmatprep.subr.mxu0 %v4644_v52  ;;  %v1865_v61 = vadd.f32 %v1864_v0, %v4241_v29 }
 0x5b6   :  { %3489 = vmatpush3.msra.mxu0 %v4644_v52 }
 0x5b7   :  { %v1790_v7 = vrot.slane %v1789_v47, 1  ;;  %3491 = vmatmul.mubr.msk.f32.vlgmr.msra.gmra.mxu0 %vm307_vm0, %v4458_v3 }
 0x5b8   :  { %3493 = vmatprep.mubr.msk.f32.mxu0 %vm307_vm0, %v4536_v9 }
 0x5b9   :  { %v1791_v2 = vadd.f32 %v1790_v7, %v1789_v47  ;;  %v1884_v47 = vpop.f32.mrf.mxu1 }
 0x5ba   :  { %v1885_v0 = vadd.f32 %v1884_v47, %v4232_v18 }
 0x5bb   :  { %1792 = vst [vmem:[#allocation3 + $0x5] sm:$0x1] %v1791_v2  ;;  %3494 = vmatmul.mubr.msk.f32.gmra.mxu0 %vm307_vm0, %v4540_v40  ;;  %v1880_v2 = vadd.f32 %v3467_v14, %v4234_v19  ;;  %v3473_v15 = vpop.f32.mrf.mxu1 }
 0x5bc   :  { %3496 = vmatprep.mubr.msk.f32.mxu0 %vm307_vm0, %v4544_v45 }
 0x5bf   :  { %3497 = vmatmul.mubr.msk.f32.gmra.mxu0 %vm307_vm0, %v4548_v21 }
 0x5c0   :  { %3499 = vmatprep.mubr.msk.f32.mxu0 %vm307_vm0, %v4552_v42 }
 0x5c3   :  { %3500 = vmatmul.mubr.msk.f32.gmra.mxu0 %vm307_vm0, %v4556_v49 }
 0x5c4   :  { %3538 = vmatprep.mubr.msk.f32.mxu0 %vm307_vm0, %v4474_v37  ;;  %v1875_v37 = vadd.f32 %v1874_v50, %v4236_v23 }
 0x677   :  { %v3492_v17 = vpop.f32.mrf.mxu0 }
 0x678   :  { %v2009_v35 = vadd.f32 %v3492_v17, %v1870_v26  ;;  %v1894_v17 = vpop.f32.mrf.mxu1 }
 0x679   :  { %v1969_v7 = vpop.f32.mrf.mxu0 }
 0x67a   :  { %v2008_v52 = vadd.f32 %v1969_v7, %v1865_v61  ;;  %3689 = vtanh.f32 %v2009_v35  ;;  %v1900_v61 = vadd.f32 %v3473_v15, %v4226_v8 }
 0x67b   :  { %v3495_v53 = vpop.f32.mrf.mxu0 }
 0x67c   :  { %3691 = vtanh.f32 %v2008_v52  ;;  %v2011_v27 = vadd.f32 %v3495_v53, %v1880_v2  ;;  %v1895_v53 = vadd.f32 %v1894_v17, %v4230_v16 }
 0x67d   :  { %v1979_v6 = vpop.f32.mrf.mxu0 }
 0x67e   :  { %v2010_v58 = vadd.f32 %v1979_v6, %v1875_v37  ;;  %3693 = vtanh.f32 %v2011_v27 }
 0x67f   :  { %v3498_v39 = vpop.f32.mrf.mxu0 }
 0x680   :  { %3695 = vtanh.f32 %v2010_v58  ;;  %v2013_v26 = vadd.f32 %v3498_v39, %v1890_v63 }
 0x681   :  { %v1989_v14 = vpop.f32.mrf.mxu0 }
 0x682   :  { %v2012_v35 = vadd.f32 %v1989_v14, %v1885_v0  ;;  %3697 = vtanh.f32 %v2013_v26 }
 0x683   :  { %v3501_v50 = vpop.f32.mrf.mxu0 }
 0x684   :  { %3699 = vtanh.f32 %v2012_v35  ;;  %v2015_v52 = vadd.f32 %v3501_v50, %v1900_v61 }
 0x685   :  { %v1999_v7 = vpop.f32.mrf.mxu0 }
 0x686   :  { %3701 = vtanh.f32 %v2015_v52  ;;  %v2014_v6 = vadd.f32 %v1999_v7, %v1895_v53 }
 0x687   :  { %v4714_v27 = vpop.eup %3689 }
 0x688   :  { %3703 = vtanh.f32 %v2014_v6  ;;  %v2034_v15 = vmul.f32 %v4714_v27, %v4252_v55 }
 0x689   :  { %v4716_v54 = vpop.eup %3691 }
 0x68a   :  { %v2033_v63 = vmul.f32 %v4716_v54, %v4249_v51 }
 0x68b   :  { %v4720_v39 = vpop.eup %3693 }
 0x68c   :  { %v2041_v2 = vadd.f32 %v2034_v15, %v2033_v63  ;;  %v2036_v0 = vmul.f32 %v4720_v39, %v4262_v62 }
 0x68d   :  { %v4724_v47 = vpop.eup %3695 }
 0x68e   :  { %v2035_v37 = vmul.f32 %v4724_v47, %v4258_v60 }
 0x68f   :  { %v4728_v58 = vpop.eup %3697 }
 0x690   :  { %v2042_v26 = vadd.f32 %v2041_v2, %v2035_v37  ;;  %v2038_v50 = vmul.f32 %v4728_v58, %v4280_v24 }
 0x691   :  { %v4732_v17 = vpop.eup %3699 }
 0x692   :  { %v2037_v14 = vmul.f32 %v4732_v17, %v4272_v10  ;;  %v2043_v61 = vadd.f32 %v2042_v26, %v2036_v0 }
 0x693   :  { %v4736_v35 = vpop.eup %3701 }
 0x694   :  { %v2044_v53 = vadd.f32 %v2043_v61, %v2037_v14  ;;  %3522 = vmatprep.subr.mxu0 %v4736_v35  ;;  %v2040_v63 = vmul.f32 %v4736_v35, %v4297_v36 }
 0x695   :  { %v4741_v52 = vpop.eup %3703  ;;  %3523 = vmatpush3.msra.mxu0 %v4736_v35 }
 0x696   :  { %v2039_v7 = vmul.f32 %v4741_v52, %v4291_v33  ;;  %v2045_v6 = vadd.f32 %v2044_v53, %v2038_v50  ;;  %3524 = vmatprep.subr.mxu0 %v4741_v52  ;;  %v5042_v50 = vmov 0.0  }
 0x697   :  { %3525 = vmatpush3.msra.mxu0 %v4741_v52 }
 0x698   :  { %v2046_v15 = vadd.f32 %v2045_v6, %v2039_v7  ;;  %3526 = vmatprep.subr.mxu0 %v4728_v58 }
 0x699   :  { %3527 = vmatpush3.msra.mxu0 %v4728_v58 }
 0x69a   :  { %v2047_v2 = vadd.f32 %v2046_v15, %v2040_v63  ;;  %3528 = vmatprep.subr.mxu0 %v4732_v17 }
 0x69b   :  { %3529 = vmatpush3.msra.mxu0 %v4732_v17 }
 0x69c   :  { %v2048_v37 = vrot.slane %v2047_v2, 4  ;;  %3530 = vmatprep.subr.mxu0 %v4720_v39 }
 0x69d   :  { %3531 = vmatpush3.msra.mxu0 %v4720_v39 }
 0x69e   :  { %v2049_v0 = vadd.f32 %v2048_v37, %v2047_v2  ;;  %3532 = vmatprep.subr.mxu0 %v4724_v47 }
 0x69f   :  { %3533 = vmatpush3.msra.mxu0 %v4724_v47 }
 0x6a0   :  { %v2050_v26 = vrot.slane %v2049_v0, 2  ;;  %3534 = vmatprep.subr.mxu0 %v4714_v27 }
 0x6a1   :  { %3535 = vmatpush3.msra.mxu0 %v4714_v27 }
 0x6a2   :  { %v2051_v14 = vadd.f32 %v2050_v26, %v2049_v0  ;;  %3536 = vmatprep.subr.mxu0 %v4716_v54 }
 0x6a3   :  { %3537 = vmatpush3.msra.mxu0 %v4716_v54 }
 0x6a4   :  { %v2052_v61 = vrot.slane %v2051_v14, 1  ;;  %3539 = vmatmul.mubr.msk.f32.vlgmr.msra.gmra.mxu0 %vm307_vm0, %v4458_v3  ;;  %3572 = vmatprep.subr.mxu0 %v5042_v50  ;;  %v3512_v3 = vpop.f32.mrf.mxu1 }
 0x6a5   :  { %3541 = vmatprep.mubr.msk.f32.mxu0 %vm307_vm0, %v4536_v9  ;;  %v2132_v15 = vadd.f32 %v3512_v3, %v4238_v25 }
 0x6a6   :  { %v2053_v53 = vadd.f32 %v2052_v61, %v2051_v14  ;;  %v2126_v7 = vpop.f32.mrf.mxu1 }
 0x6a7   :  { %v2127_v2 = vadd.f32 %v2126_v7, %v4241_v29 }
 0x6a8   :  { %2054 = vst [vmem:[#allocation3 + $0x6] sm:$0x1] %v2053_v53  ;;  %3542 = vmatmul.mubr.msk.f32.gmra.mxu0 %vm307_vm0, %v4540_v40  ;;  %v3515_v9 = vpop.f32.mrf.mxu1 }
 0x6a9   :  { %3544 = vmatprep.mubr.msk.f32.mxu0 %vm307_vm0, %v4544_v45 }
 0x6aa   :  { %v2136_v6 = vpop.f32.mrf.mxu1 }
 0x6ac   :  { %3545 = vmatmul.mubr.msk.f32.gmra.mxu0 %vm307_vm0, %v4548_v21  ;;  %v3518_v63 = vpop.f32.mrf.mxu1  ;;  %v2142_v21 = vadd.f32 %v3515_v9, %v4234_v19 }
 0x6ad   :  { %3547 = vmatprep.mubr.msk.f32.mxu0 %vm307_vm0, %v4552_v42  ;;  %v2152_v50 = vadd.f32 %v3518_v63, %v4228_v13 }
 0x6ae   :  { %v2146_v37 = vpop.f32.mrf.mxu1 }
 0x6af   :  { %v2147_v29 = vadd.f32 %v2146_v37, %v4232_v18 }
 0x6b0   :  { %3548 = vmatmul.mubr.msk.f32.gmra.mxu0 %vm307_vm0, %v4556_v49  ;;  %v2137_v49 = vadd.f32 %v2136_v6, %v4236_v23  ;;  %v3521_v61 = vpop.f32.mrf.mxu1 }
 0x6b1   :  { %v2162_v9 = vadd.f32 %v3521_v61, %v4226_v8 }
 0x764   :  { %v3540_v40 = vpop.f32.mrf.mxu0 }
 0x765   :  { %v2271_v45 = vadd.f32 %v3540_v40, %v2132_v15  ;;  %v2156_v15 = vpop.f32.mrf.mxu1 }
 0x766   :  { %v2231_v0 = vpop.f32.mrf.mxu0  ;;  %v2157_v6 = vadd.f32 %v2156_v15, %v4230_v16 }
 0x767   :  { %v2270_v26 = vadd.f32 %v2231_v0, %v2127_v2  ;;  %3705 = vtanh.f32 %v2271_v45 }
 0x768   :  { %v3543_v42 = vpop.f32.mrf.mxu0 }
 0x769   :  { %3707 = vtanh.f32 %v2270_v26  ;;  %v2273_v14 = vadd.f32 %v3543_v42, %v2142_v21 }
 0x76a   :  { %v2241_v53 = vpop.f32.mrf.mxu0 }
 0x76b   :  { %v2272_v25 = vadd.f32 %v2241_v53, %v2137_v49  ;;  %3709 = vtanh.f32 %v2273_v14 }
 0x76c   :  { %v3546_v3 = vpop.f32.mrf.mxu0 }
 0x76d   :  { %3711 = vtanh.f32 %v2272_v25  ;;  %v2275_v7 = vadd.f32 %v3546_v3, %v2152_v50  ;;  %v2559_v3 = vld [vmem:[#allocation7] sm:$0xff] }
 0x76e   :  { %v2251_v19 = vpop.f32.mrf.mxu0  ;;  %3566 = vmatprep.mubr.msk.f32.mxu1 %vm307_vm0, %v2559_v3 }
 0x76f   :  { %v2274_v40 = vadd.f32 %v2251_v19, %v2147_v29  ;;  %3713 = vtanh.f32 %v2275_v7 }
 0x770   :  { %v3549_v23 = vpop.f32.mrf.mxu0 }
 0x771   :  { %3715 = vtanh.f32 %v2274_v40  ;;  %v2277_v2 = vadd.f32 %v3549_v23, %v2162_v9 }
 0x772   :  { %v2261_v45 = vpop.f32.mrf.mxu0 }
 0x773   :  { %v2276_v13 = vadd.f32 %v2261_v45, %v2157_v6  ;;  %3717 = vtanh.f32 %v2277_v2 }
 0x774   :  { %v4785_v63 = vpop.eup %3705 }
 0x775   :  { %3719 = vtanh.f32 %v2276_v13  ;;  %v2296_v8 = vmul.f32 %v4785_v63, %v4252_v55 }
 0x776   :  { %v4787_v18 = vpop.eup %3707 }
 0x777   :  { %v2295_v50 = vmul.f32 %v4787_v18, %v4249_v51 }
 0x778   :  { %v4791_v37 = vpop.eup %3709 }
 0x779   :  { %v2303_v16 = vadd.f32 %v2296_v8, %v2295_v50  ;;  %v2298_v42 = vmul.f32 %v4791_v37, %v4262_v62 }
 0x77a   :  { %v4795_v0 = vpop.eup %3711 }
 0x77b   :  { %v2297_v21 = vmul.f32 %v4795_v0, %v4258_v60 }
 0x77c   :  { %v4799_v26 = vpop.eup %3713 }
 0x77d   :  { %v2304_v49 = vadd.f32 %v2303_v16, %v2297_v21  ;;  %v2300_v55 = vmul.f32 %v4799_v26, %v4280_v24 }
 0x77e   :  { %v4803_v14 = vpop.eup %3715 }
 0x77f   :  { %v2299_v51 = vmul.f32 %v4803_v14, %v4272_v10  ;;  %v2305_v61 = vadd.f32 %v2304_v49, %v2298_v42 }
 0x780   :  { %v4807_v53 = vpop.eup %3717 }
 0x781   :  { %v2306_v25 = vadd.f32 %v2305_v61, %v2299_v51  ;;  %v2302_v7 = vmul.f32 %v4807_v53, %v4297_v36 }
 0x782   :  { %v4811_v60 = vpop.eup %3719 }
 0x783   :  { %v2301_v62 = vmul.f32 %v4811_v60, %v4291_v33  ;;  %v2307_v29 = vadd.f32 %v2306_v25, %v2300_v55 }
 0x785   :  { %v2308_v10 = vadd.f32 %v2307_v29, %v2301_v62  ;;  %v2343_v62 = vlaneseq }
 0x787   :  { %v2309_v15 = vadd.f32 %v2308_v10, %v2302_v7  ;;  %v2344_v29 = vshrl.u32 %v2343_v62, 7 }
 0x789   :  { %v2310_v19 = vrot.slane %v2309_v15, 4  ;;  %v2345_v7 = vsub.s32 0, %v2344_v29  ;;  %v2373_v10 = vsub.s32 1, %v2344_v29 }
 0x78b   :  { %v2311_v9 = vadd.f32 %v2310_v19, %v2309_v15  ;;  %v2401_v15 = vsub.s32 2, %v2344_v29 }
 0x78d   :  { %v2312_v40 = vrot.slane %v2311_v9, 2 }
 0x78f   :  { %v2313_v23 = vadd.f32 %v2312_v40, %v2311_v9  ;;  %v2429_v9 = vsub.s32 3, %v2344_v29  ;;  %v2457_v40 = vsub.s32 4, %v2344_v29 }
 0x791   :  { %v2314_v24 = vrot.slane %v2313_v23, 1 }
 0x793   :  { %v2315_v6 = vadd.f32 %v2314_v24, %v2313_v23  ;;  %v2485_v23 = vsub.s32 5, %v2344_v29  ;;  %v2513_v24 = vsub.s32 6, %v2344_v29 }
 0x795   :  { %2316 = vst [vmem:[#allocation3 + $0x7] sm:$0x1] %v2315_v6 }
 0x79c   :  { %v2317_v2 = vld [vmem:[#allocation3] sm:$0xff] }
 0x79d   :  { %v2318_v45 = vrot.slane %v2317_v2, 4 }
 0x79f   :  { %v2319_v13 = vmax.f32 %v2317_v2, %v2318_v45 }
 0x7a1   :  { %v2320_v50 = vrot.slane %v2319_v13, 2 }
 0x7a3   :  { %v2321_v8 = vmax.f32 %v2319_v13, %v2320_v50 }
 0x7a5   :  { %v2322_v16 = vrot.slane %v2321_v8, 1 }
 0x7a7   :  { %v2323_v33 = vmax.f32 %v2321_v8, %v2322_v16 }
 0x7a9   :  { %v2324_v21 = vsub.f32 %v2317_v2, %v2323_v33  ;;  %v2541_v2 = vsub.s32 7, %v2344_v29 }
 0x7ab   :  { %v2325_v42 = vmul.f32 1.442695, %v2324_v21 }
 0x7ad   :  { %3721 = vpow2.f32 %v2325_v42 }
 0x7ba   :  { %v3722_v36 = vpop.eup %3721 }
 0x7bb   :  { %v2327_v49 = vrot.slane %v3722_v36, 4 }
 0x7bd   :  { %v2328_v51 = vadd.f32 %v3722_v36, %v2327_v49 }
 0x7bf   :  { %v2329_v61 = vrot.slane %v2328_v51, 2 }
 0x7c1   :  { %v2330_v55 = vadd.f32 %v2329_v61, %v2328_v51 }
 0x7c3   :  { %v2331_v25 = vrot.slane %v2330_v55, 1 }
 0x7c5   :  { %v2332_v3 = vadd.f32 %v2331_v25, %v2330_v55 }
 0x7c7   :  { %3723 = vrcp.f32 %v2332_v3 }
 0x7d4   :  { %v3724_v19 = vpop.eup %3723 }
 0x7d5   :  { %v2334_v6 = vmul.f32 %v3724_v19, %v3722_v36 }
 0x7d7   :  { %v4818_v45 = vrot.slane %v2334_v6, %v2345_v7  ;;  %v4820_v13 = vrot.slane %v2334_v6, %v2373_v10  ;;  %v4822_v50 = vrot.slane %v2334_v6, %v2401_v15  ;;  %v4824_v8 = vrot.slane %v2334_v6, %v2429_v9 }
 0x7d8   :  { %v4826_v16 = vrot.slane %v2334_v6, %v2457_v40  ;;  %v4828_v33 = vrot.slane %v2334_v6, %v2485_v23  ;;  %v4830_v21 = vrot.slane %v2334_v6, %v2513_v24  ;;  %v4836_v49 = vrot.slane %v2334_v6, %v2541_v2  ;;  %v5043_v6 = vld [vmem:[#allocation29_spill] sm:$0xff] }
 0x7d9   :  { %v2354_v42 = vmul.f32 %v4284_v28, %v4818_v45  ;;  %v2382_v36 = vmul.f32 %v4360_v20, %v4820_v13  ;;  %v2410_v61 = vmul.f32 %v4432_v41, %v4822_v50  ;;  %v2353_v55 = vmul.f32 %v4289_v32, %v4818_v45 }
 0x7da   :  { %v2381_v25 = vmul.f32 %v4365_v30, %v4820_v13  ;;  %v2438_v3 = vmul.f32 %v4508_v43, %v4824_v8  ;;  %v2466_v28 = vmul.f32 %v4592_v46, %v4826_v16  ;;  %v2494_v20 = vmul.f32 %v4664_v11, %v4828_v33 }
 0x7db   :  { %v2390_v51 = vadd.f32 %v2382_v36, %v2354_v42  ;;  %v2522_v62 = vmul.f32 %v4736_v35, %v4830_v21  ;;  %v2409_v32 = vmul.f32 %v4437_v44, %v4822_v50  ;;  %v2352_v30 = vmul.f32 %v4274_v12, %v4818_v45 }
 0x7dc   :  { %v2389_v41 = vadd.f32 %v2381_v25, %v2353_v55  ;;  %v2550_v43 = vmul.f32 %v4807_v53, %v4836_v49  ;;  %v2437_v46 = vmul.f32 %v4513_v4, %v4824_v8  ;;  %v2465_v11 = vmul.f32 %v4597_v48, %v4826_v16  ;;  %v5046_v25 = vld [vmem:[#allocation34_spill] sm:$0xff] }
 0x7dd   :  { %v2418_v29 = vadd.f32 %v2410_v61, %v2390_v51  ;;  %v2380_v35 = vmul.f32 %v4352_v57, %v4820_v13  ;;  %v2493_v44 = vmul.f32 %v4669_v1, %v4828_v33  ;;  %v2521_v12 = vmul.f32 %v4741_v52, %v4830_v21  ;;  %v5045_v51 = vld [vmem:[#allocation19_spill] sm:$0xff] }
 0x7de   :  { %v2417_v10 = vadd.f32 %v2409_v32, %v2389_v41  ;;  %v2408_v53 = vmul.f32 %v4424_v34, %v4822_v50  ;;  %v2351_v4 = vmul.f32 %v4278_v22, %v4818_v45  ;;  %v2379_v48 = vmul.f32 %v4356_v5, %v4820_v13 }
 0x7df   :  { %v2446_v7 = vadd.f32 %v2438_v3, %v2418_v29  ;;  %v2388_v15 = vadd.f32 %v2380_v35, %v2352_v30  ;;  %v2549_v9 = vmul.f32 %v4811_v60, %v4836_v49  ;;  %v2436_v1 = vmul.f32 %v4500_v31, %v4824_v8  ;;  %v5044_v31 = vld [vmem:[#allocation15_spill] sm:$0xff] }
 0x7e0   :  { %v2445_v57 = vadd.f32 %v2437_v46, %v2417_v10  ;;  %v2464_v52 = vmul.f32 %v4584_v56, %v4826_v16  ;;  %v2387_v23 = vadd.f32 %v2379_v48, %v2351_v4  ;;  %v2407_v34 = vmul.f32 %v4428_v38, %v4822_v50  ;;  %v5047_v29 = vld [vmem:[#allocation23_spill] sm:$0xff]  ;;  %v5051_v4 = vld [vmem:[#allocation20_spill] sm:$0xff] }
 0x7e1   :  { %v2474_v19 = vadd.f32 %v2466_v28, %v2446_v7  ;;  %v2416_v40 = vadd.f32 %v2408_v53, %v2388_v15  ;;  %v2492_v5 = vmul.f32 %v4656_v59, %v4828_v33  ;;  %v2435_v2 = vmul.f32 %v5043_v6, %v4824_v8  ;;  %v5049_v10 = vld [vmem:[#allocation27_spill] sm:$0xff] }
 0x7e2   :  { %v2473_v24 = vadd.f32 %v2465_v11, %v2445_v57  ;;  %v2415_v42 = vadd.f32 %v2407_v34, %v2387_v23  ;;  %v2350_v36 = vmul.f32 %v5044_v31, %v4818_v45  ;;  %v2378_v56 = vmul.f32 %v5045_v51, %v4820_v13  ;;  %v5056_v31 = vld [vmem:[#allocation13_spill] sm:$0xff] }
 0x7e3   :  { %v2502_v22 = vadd.f32 %v2494_v20, %v2474_v19  ;;  %v2444_v60 = vadd.f32 %v2436_v1, %v2416_v40  ;;  %v2520_v38 = vmul.f32 %v4728_v58, %v4830_v21  ;;  %v2463_v3 = vmul.f32 %v5046_v25, %v4826_v16  ;;  %v5052_v1 = vld [vmem:[#allocation32_spill] sm:$0xff]  ;;  %v5058_v25 = vld [vmem:[#allocation33_spill] sm:$0xff] }
 0x7e4   :  { %v2501_v55 = vadd.f32 %v2493_v44, %v2473_v24  ;;  %v2443_v28 = vadd.f32 %v2435_v2, %v2415_v42  ;;  %v2386_v20 = vadd.f32 %v2378_v56, %v2350_v36  ;;  %v2406_v41 = vmul.f32 %v5047_v29, %v4822_v50 }
 0x7e5   :  { %v2530_v61 = vadd.f32 %v2522_v62, %v2502_v22  ;;  %v2472_v59 = vadd.f32 %v2464_v52, %v2444_v60  ;;  %v2548_v46 = vmul.f32 %v4799_v26, %v4836_v49  ;;  %v5048_v62 = vld [vmem:[#allocation39_spill] sm:$0xff]  ;;  %v2434_v44 = vmul.f32 %v5049_v10, %v4824_v8  ;;  %v5055_v60 = vld [vmem:[#allocation28_spill] sm:$0xff] }
 0x7e6   :  { %v2529_v30 = vadd.f32 %v2521_v12, %v2501_v55  ;;  %v2491_v11 = vmul.f32 %v5048_v62, %v4828_v33  ;;  %v2471_v7 = vadd.f32 %v2463_v3, %v2443_v28  ;;  %v2414_v58 = vadd.f32 %v2406_v41, %v2386_v20  ;;  %v5059_v28 = vld [vmem:[#allocation21_spill] sm:$0xff] }
 0x7e7   :  { %v2558_v32 = vadd.f32 %v2550_v43, %v2530_v61  ;;  %v2500_v35 = vadd.f32 %v2492_v5, %v2472_v59  ;;  %v2519_v53 = vmul.f32 %v4732_v17, %v4830_v21  ;;  %v5050_v43 = vld [vmem:[#allocation16_spill] sm:$0xff]  ;;  %v2377_v26 = vmul.f32 %v5051_v4, %v4820_v13  ;;  %v5054_v5 = vld [vmem:[#allocation37_spill] sm:$0xff] }
 0x7e8   :  { %v2557_v15 = vadd.f32 %v2549_v9, %v2529_v30  ;;  %v2349_v12 = vmul.f32 %v5050_v43, %v4818_v45  ;;  %v2499_v19 = vadd.f32 %v2491_v11, %v2471_v7  ;;  %v2442_v57 = vadd.f32 %v2434_v44, %v2414_v58  ;;  %v5053_v17 = vld [vmem:[#allocation24_spill] sm:$0xff]  ;;  %v5062_v11 = vld [vmem:[#allocation38_spill] sm:$0xff]  ;;  %v5063_v58 = vld [vmem:[#allocation25_spill] sm:$0xff] }
 0x7e9   :  { %3550 = vmatprep.subr.mxu1 %v2558_v32  ;;  %v2528_v48 = vadd.f32 %v2520_v38, %v2500_v35  ;;  %v2462_v40 = vmul.f32 %v5052_v1, %v4826_v16  ;;  %v2547_v9 = vmul.f32 %v4803_v14, %v4836_v49  ;;  %v2405_v23 = vmul.f32 %v5053_v17, %v4822_v50  ;;  %v5057_v14 = vld [vmem:[#allocation17_spill] sm:$0xff] }
 0x7ea   :  { %3551 = vmatpush3.msra.mxu1 %v2558_v32  ;;  %v2385_v52 = vadd.f32 %v2377_v26, %v2349_v12  ;;  %v2527_v22 = vadd.f32 %v2519_v53, %v2499_v19  ;;  %v2490_v6 = vmul.f32 %v5054_v5, %v4828_v33  ;;  %v2433_v42 = vmul.f32 %v5055_v60, %v4824_v8  ;;  %v5060_v32 = vld [vmem:[#allocation14_spill] sm:$0xff] }
 0x7eb   :  { %3552 = vmatprep.subr.mxu1 %v2557_v15  ;;  %v2556_v34 = vadd.f32 %v2548_v46, %v2528_v48  ;;  %v2470_v24 = vadd.f32 %v2462_v40, %v2442_v57  ;;  %v2348_v36 = vmul.f32 %v5056_v31, %v4818_v45  ;;  %v2376_v51 = vmul.f32 %v5057_v14, %v4820_v13  ;;  %v5061_v46 = vld [vmem:[#allocation18_spill] sm:$0xff] }
 0x7ec   :  { %3553 = vmatpush3.msra.mxu1 %v2557_v15  ;;  %v2413_v2 = vadd.f32 %v2405_v23, %v2385_v52  ;;  %v2555_v56 = vadd.f32 %v2547_v9, %v2527_v22  ;;  %v2518_v55 = vmul.f32 %v4720_v39, %v4830_v21  ;;  %v2461_v3 = vmul.f32 %v5058_v25, %v4826_v16  ;;  %v5064_v53 = vld [vmem:[#allocation22_spill] sm:$0xff] }
 0x7ed   :  { %3554 = vmatprep.subr.mxu1 %v2556_v34  ;;  %v2498_v61 = vadd.f32 %v2490_v6, %v2470_v24  ;;  %v2384_v59 = vadd.f32 %v2376_v51, %v2348_v36  ;;  %v2404_v20 = vmul.f32 %v5059_v28, %v4822_v50  ;;  %v2546_v41 = vmul.f32 %v4791_v37, %v4836_v49  ;;  %v5066_v48 = vld [vmem:[#allocation26_spill] sm:$0xff] }
 0x7ee   :  { %3555 = vmatpush3.msra.mxu1 %v2556_v34  ;;  %v2441_v38 = vadd.f32 %v2433_v42, %v2413_v2  ;;  %v2347_v30 = vmul.f32 %v5060_v32, %v4818_v45  ;;  %v2375_v39 = vmul.f32 %v5061_v46, %v4820_v13  ;;  %v2489_v35 = vmul.f32 %v5062_v11, %v4828_v33  ;;  %v5065_v13 = vld [vmem:[#allocation30_spill] sm:$0xff]  ;;  %v2688_v32 = vld [vmem:[%s4983_s7] sm:$0xf] }
 0x7ef   :  { %3556 = vmatprep.subr.mxu1 %v2555_v56  ;;  %v2526_v29 = vadd.f32 %v2518_v55, %v2498_v61  ;;  %v2412_v7 = vadd.f32 %v2404_v20, %v2384_v59  ;;  %v2432_v10 = vmul.f32 %v5063_v58, %v4824_v8  ;;  %v2403_v37 = vmul.f32 %v5064_v53, %v4822_v50  ;;  %v5067_v50 = vld [vmem:[#allocation35_spill] sm:$0xff]  ;;  %v2560_v36 = vld [vmem:[#allocation7 + $0x8] sm:$0xff] }
 0x7f0   :  { %3557 = vmatpush3.msra.mxu1 %v2555_v56  ;;  %v2469_v62 = vadd.f32 %v2461_v3, %v2441_v38  ;;  %v2383_v15 = vadd.f32 %v2375_v39, %v2347_v30  ;;  %v2517_v45 = vmul.f32 %v4724_v47, %v4830_v21  ;;  %v2460_v4 = vmul.f32 %v5065_v13, %v4826_v16  ;;  %v5068_v47 = vld [vmem:[#allocation31_spill] sm:$0xff] }
 0x7f1   :  { %v2554_v44 = vadd.f32 %v2546_v41, %v2526_v29  ;;  %v2440_v12 = vadd.f32 %v2432_v10, %v2412_v7  ;;  %v2431_v19 = vmul.f32 %v5066_v48, %v4824_v8  ;;  %v2545_v1 = vmul.f32 %v4795_v0, %v4836_v49  ;;  %v5069_v8 = vld [vmem:[#allocation36_spill] sm:$0xff] }
 0x7f2   :  { %v2497_v43 = vadd.f32 %v2489_v35, %v2469_v62  ;;  %v2411_v26 = vadd.f32 %v2403_v37, %v2383_v15  ;;  %v2488_v9 = vmul.f32 %v5067_v50, %v4828_v33  ;;  %v2459_v17 = vmul.f32 %v5068_v47, %v4826_v16 }
 0x7f3   :  { %3558 = vmatprep.subr.mxu1 %v2554_v44  ;;  %v2468_v40 = vadd.f32 %v2460_v4, %v2440_v12  ;;  %v2516_v22 = vmul.f32 %v4714_v27, %v4830_v21  ;;  %v2487_v5 = vmul.f32 %v5069_v8, %v4828_v33  ;;  %v2544_v0 = vmul.f32 %v4785_v63, %v4836_v49  ;;  %v2561_v33 = vld [vmem:[#allocation7 + $0x10] sm:$0xff]  ;;  %v2562_v63 = vld [vmem:[#allocation7 + $0x18] sm:$0xff] }
 0x7f4   :  { %3559 = vmatpush3.msra.mxu1 %v2554_v44  ;;  %v2525_v57 = vadd.f32 %v2517_v45, %v2497_v43  ;;  %v2439_v52 = vadd.f32 %v2431_v19, %v2411_v26  ;;  %v2515_v60 = vmul.f32 %v4716_v54, %v4830_v21  ;;  %v2543_v31 = vmul.f32 %v4787_v18, %v4836_v49  ;;  %v2585_v21 = vpop.permute.xlu0 %2584  ;;  %v2580_v18 = vpop.permute.xlu1 %2579 }
 0x7f5   :  { %v2496_v34 = vadd.f32 %v2488_v9, %v2468_v40  ;;  %v5070_v54 = vmov 0.0  }
 0x7f6   :  { %v2553_v23 = vadd.f32 %v2545_v1, %v2525_v57  ;;  %v2467_v24 = vadd.f32 %v2459_v17, %v2439_v52  ;;  %3580 = vmatprep.mubr.msk.f32.mxu0 %vm3805_vm2, %v5070_v54 }
 0x7f7   :  { %v2524_v6 = vadd.f32 %v2516_v22, %v2496_v34 }
 0x7f8   :  { %3560 = vmatprep.subr.mxu1 %v2553_v23  ;;  %v2495_v2 = vadd.f32 %v2487_v5, %v2467_v24  ;;  %v2575_v61 = vpop.permute.xlu0 %2574  ;;  %v2570_v59 = vpop.permute.xlu1 %2569 }
 0x7f9   :  { %3561 = vmatpush3.msra.mxu1 %v2553_v23  ;;  %v2552_v16 = vadd.f32 %v2544_v0, %v2524_v6 }
 0x7fa   :  { %v2523_v42 = vadd.f32 %v2515_v60, %v2495_v2 }
 0x7fb   :  { %3562 = vmatprep.subr.mxu1 %v2552_v16 }
 0x7fc   :  { %3563 = vmatpush3.msra.mxu1 %v2552_v16  ;;  %v2551_v27 = vadd.f32 %v2543_v31, %v2523_v42  ;;  %v2693_v30 = vpop.permute.xlu0 %2692 }
 0x7fe   :  { %3564 = vmatprep.subr.mxu1 %v2551_v27 }
 0x7ff   :  { %3565 = vmatpush3.msra.mxu1 %v2551_v27 }
 0x800   :  { %3567 = vmatmul.mubr.msk.f32.vlgmr.msra.gmra.mxu1 %vm307_vm0, %v2560_v36 }
 0x801   :  { %3569 = vmatprep.mubr.msk.f32.mxu1 %vm307_vm0, %v2561_v33 }
 0x804   :  { %3570 = vmatmul.mubr.msk.f32.gmra.mxu1 %vm307_vm0, %v2562_v63 }
 0x8c0   :  { %v3568_v14 = vpop.f32.mrf.mxu1 }
 0x8c1   :  { %v2671_v38 = vadd.f32 %v3568_v14, %v2575_v61 }
 0x8c2   :  { %v2665_v49 = vpop.f32.mrf.mxu1 }
 0x8c3   :  { %v2666_v28 = vadd.f32 %v2665_v49, %v2570_v59  ;;  %v2685_v29 = vmax.f32 %v2671_v38, 0.0 }
 0x8c4   :  { %v3571_v51 = vpop.f32.mrf.mxu1 }
 0x8c5   :  { %v2681_v56 = vadd.f32 %v3571_v51, %v2585_v21  ;;  %v2684_v41 = vmax.f32 %v2666_v28, 0.0 }
 0x8c6   :  { %v2675_v55 = vpop.f32.mrf.mxu1 }
 0x8c7   :  { %v2687_v25 = vmax.f32 %v2681_v56, 0.0  ;;  %v2676_v3 = vadd.f32 %v2675_v55, %v2580_v18 }
 0x8c9   :  { %v2686_v20 = vmax.f32 %v2676_v3, 0.0  ;;  %3573 = vmatpush3.msra.mxu0 %v2687_v25 }
 0x8ca   :  { %3574 = vmatprep.subr.mxu0 %v5070_v54 }
 0x8cb   :  { %3575 = vmatpush3.msra.mxu0 %v2686_v20 }
 0x8cc   :  { %3576 = vmatprep.subr.mxu0 %v5070_v54 }
 0x8cd   :  { %3577 = vmatpush3.msra.mxu0 %v2685_v29 }
 0x8ce   :  { %3578 = vmatprep.subr.mxu0 %v5070_v54 }
 0x8cf   :  { %3579 = vmatpush3.msra.mxu0 %v2684_v41 }
 0x8d0   :  { %3581 = vmatmul.mubr.msk.f32.vlgmr.msra.gmra.mxu0 %vm177_vm1, %v2688_v32 }
 0x990   :  { %v2764_v46 = vpop.f32.mrf.mxu0 }
 0x991   :  { %v2765_v39 = vadd.f32 %v2764_v46, %v2693_v30 }
 0x992   :  { %v3582_v62 = vpop.f32.mrf.mxu0 }
 0x993   :  { %2768 = vst [vmem:[#allocation9] sm:$0xf] %v2765_v39 }
 0x994   :  { %3784 = shalt.err (!%p3781_p0)
}
 0x995   :  { %2778 = dma.vmem_to_hbm [thread:$0]  %s2776_s20, 64, %s4985_s9, [#allocation6]  }
 0x996   :  { %3797 = dma.done.wait [#allocation6], 64  }
 0x997   :  { %3798 = vsyncadd [#allocation6], 4294967232 }
 0x998   :  { %2782 = vsyncpa [#allocation5], 1 }
 0x999   :  { %2783 = vsyncpa [#allocation8], 1 }
 0x99a   :  { %2784 = vsyncpa [#allocation6], 1 }

</bundles_post_ra>
